<compile_context>
chip_gen: v6e
topology: v6e:2x2x1
jax: 0.10.0
libtpu: 0.0.40
codegen_flags: <defaults>
</compile_context>

<pallas_src>
import numpy as np
import jax
import jax.numpy as jnp
from jax import lax
from jax.experimental import pallas as pl
from jax.experimental.pallas import tpu as pltpu


def _round_up(x, m):
    return (x + m - 1) // m * m


def _gru_fc_lrelu_kernel(x_ref, wih_ref, whh_ref, bcomb_ref, bhhn_ref,
                         wfc_ref, bfc_ref, out_ref,
                         h_ref, gi_ref, hall_ref):
    """One (batch-block, L-chunk) grid step of GRU + FC + LeakyReLU(0.2).

    x_ref    : [1, TL*BB, Ip]  flattened chunk of concatenated input (row = t*BB + b)
    wih_ref  : [Ip, 3*Hp]      gate-padded W_ih^T   (gate order r|z|n, Hp lanes each)
    whh_ref  : [Hp, 3*Hp]      gate-padded W_hh^T
    bcomb_ref: [1, 3*Hp]       (b_ih_r+b_hh_r | b_ih_z+b_hh_z | b_ih_n)
    bhhn_ref : [1, 3*Hp]       (0 | 0 | b_hh_n)     (must stay inside the r* term)
    wfc_ref  : [1, 1, Hp]      fc weight, lane padded
    bfc_ref  : [1, 1]          fc bias
    out_ref  : [1, TL, BB]     leaky_relu(fc(h_t)) for this chunk
    h_ref    : [BB, Hp]        hidden-state carry across L-chunks   (scratch)
    gi_ref   : [TL*BB, 3*Hp]   hoisted input projection             (scratch)
    hall_ref : [TL, BB, Hp]    per-step hidden states of the chunk  (scratch)
    """
    TL, BB, _ = hall_ref.shape
    Hp, GP = whh_ref.shape

    # Fresh hidden state at the start of every sequence (first L-chunk).
    @pl.when(pl.program_id(1) == 0)
    def _():
        h_ref[...] = jnp.zeros_like(h_ref)

    # (1) Hoisted input projection: ONE MXU GEMM for the whole chunk.
    gi_ref[...] = (
        jnp.dot(x_ref[0], wih_ref[...], preferred_element_type=jnp.float32)
        + bcomb_ref[...])

    whh = whh_ref[...]
    bhh_n = jnp.broadcast_to(bhhn_ref[...], (BB, GP))   # hoisted broadcast

    # (2) Serial recurrence: only h @ W_hh + VPU/EUP gate math per step.
    #     Gate slices are 128-lane aligned (each gate padded to Hp lanes).
    def step(t, h):
        gi = gi_ref[pl.ds(t * BB, BB), :]                                  # [BB, 3Hp]
        gh = jnp.dot(h, whh, preferred_element_type=jnp.float32) + bhh_n   # [BB, 3Hp]
        r = jax.nn.sigmoid(gi[:, 0 * Hp:1 * Hp] + gh[:, 0 * Hp:1 * Hp])
        z = jax.nn.sigmoid(gi[:, 1 * Hp:2 * Hp] + gh[:, 1 * Hp:2 * Hp])
        n = jnp.tanh(gi[:, 2 * Hp:3 * Hp] + r * gh[:, 2 * Hp:3 * Hp])
        h_new = (1.0 - z) * n + z * h                                      # [BB, Hp]
        hall_ref[t] = h_new
        return h_new

    unroll = True if TL <= 16 else 4
    h_last = lax.fori_loop(0, TL, step, h_ref[...], unroll=unroll)
    h_ref[...] = h_last                                  # carry h to next L-chunk

    # (3) Hoisted FC + LeakyReLU(0.2): one bulk multiply-reduce + one bulk store.
    y = jnp.sum(hall_ref[...] * wfc_ref[...], axis=-1) + bfc_ref[...]      # [TL, BB]
    out_ref[0] = jnp.where(y > 0, y, 0.2 * y)


def _prep_params(params, input_pad, hp):
    """Transpose + gate-pad GRU/FC params (gate order r|z|n, each padded to hp lanes)."""
    w_ih = params["w_ih"].astype(jnp.float32)   # [3H, I]
    w_hh = params["w_hh"].astype(jnp.float32)   # [3H, H]
    b_ih = params["b_ih"].astype(jnp.float32)   # [3H]
    b_hh = params["b_hh"].astype(jnp.float32)   # [3H]
    w_fc = params["w_fc"].astype(jnp.float32)   # [1, H]
    b_fc = params["b_fc"].astype(jnp.float32)   # [1]
    H = w_hh.shape[1]

    def pad_gate_cols(wT, rows_pad):
        rows = wT.shape[0]
        return jnp.concatenate(
            [jnp.pad(wT[:, g * H:(g + 1) * H],
                     ((0, rows_pad - rows), (0, hp - H))) for g in range(3)],
            axis=1)

    wih_p = pad_gate_cols(w_ih.T, input_pad)    # [Ip, 3Hp]
    whh_p = pad_gate_cols(w_hh.T, hp)           # [Hp, 3Hp]

    def pad_gate_bias(parts):
        return jnp.concatenate(
            [jnp.pad(p, (0, hp - H)) for p in parts]).reshape(1, 3 * hp)

    # Fold b_ih + b_hh for the r, z gates; n gate keeps b_hh_n separate
    # (it sits inside the r * (...) term in the PyTorch GRU formulation).
    b_comb = pad_gate_bias([b_ih[:H] + b_hh[:H],
                            b_ih[H:2 * H] + b_hh[H:2 * H],
                            b_ih[2 * H:]])
    bhh_n = pad_gate_bias([jnp.zeros((H,), jnp.float32),
                           jnp.zeros((H,), jnp.float32),
                           b_hh[2 * H:]])
    wfc_p = jnp.pad(w_fc, ((0, 0), (0, hp - H))).reshape(1, 1, hp)
    bfc = b_fc.reshape(1, 1)
    return wih_p, whh_p, b_comb, bhh_n, wfc_p, bfc


def generator_qscore_gru(oligo_read, noise, params):
    """Forward pass of GeneratorQscoreGRU (single-layer, unidirectional GRU).

    oligo_read : [B, L, 16] one-hot stacked oligo+read
    noise      : [B, L, 1]  N(0,1) noise (generated by caller, matching torch semantics)
    returns    : [B, L, 1]  generated quality scores
    """
    B, L, F = oligo_read.shape
    H = params["w_hh"].shape[1]
    Hp = _round_up(H, 128)            # per-gate lane padding -> 128-aligned gate slices
    GP = 3 * Hp
    I = F + 1
    Ip = _round_up(I, 8)

    # Tiling: batch padded to a sublane-friendly block, time axis chunked.
    BB = min(_round_up(B, 8), 32)     # batch rows per grid block
    B_pad = _round_up(B, BB)
    NB = B_pad // BB
    TL = min(128, _round_up(L, 8))    # timesteps per L-chunk
    L_pad = _round_up(L, TL)
    NL = L_pad // TL

    # Build the concatenated input (one-hot + noise), time-major, batch-blocked,
    # flattened per chunk so the in-kernel input-projection GEMM needs no reshape.
    x = jnp.concatenate([oligo_read, noise], axis=2).astype(jnp.float32)   # [B, L, I]
    x = jnp.pad(x, ((0, B_pad - B), (0, L_pad - L), (0, Ip - I)))
    x = jnp.transpose(x, (1, 0, 2))                             # [L_pad, B_pad, Ip]
    x = x.reshape(L_pad, NB, BB, Ip).transpose(1, 0, 2, 3)      # [NB, L_pad, BB, Ip]
    x = x.reshape(NB, L_pad * BB, Ip)                           # row = t*BB + b

    wih_p, whh_p, b_comb, bhh_n, wfc_p, bfc = _prep_params(params, Ip, Hp)

    out_k = pl.pallas_call(
        _gru_fc_lrelu_kernel,
        out_shape=jax.ShapeDtypeStruct((NB, L_pad, BB), jnp.float32),
        grid_spec=pltpu.PrefetchScalarGridSpec(
            num_scalar_prefetch=0,
            grid=(NB, NL),                      # (batch blocks, L-chunks)
            in_specs=[
                pl.BlockSpec((1, TL * BB, Ip), lambda b, l: (b, l, 0)),   # x chunk
                pl.BlockSpec((Ip, GP), lambda b, l: (0, 0)),              # W_ih^T
                pl.BlockSpec((Hp, GP), lambda b, l: (0, 0)),              # W_hh^T
                pl.BlockSpec((1, GP), lambda b, l: (0, 0)),               # b_comb
                pl.BlockSpec((1, GP), lambda b, l: (0, 0)),               # b_hh_n
                pl.BlockSpec((1, 1, Hp), lambda b, l: (0, 0, 0)),         # w_fc
                pl.BlockSpec((1, 1), lambda b, l: (0, 0)),                # b_fc
            ],
            out_specs=pl.BlockSpec((1, TL, BB), lambda b, l: (b, l, 0)),
            scratch_shapes=[
                pltpu.VMEM((BB, Hp), jnp.float32),        # h carry across L-chunks
                pltpu.VMEM((TL * BB, GP), jnp.float32),   # hoisted input projection
                pltpu.VMEM((TL, BB, Hp), jnp.float32),    # per-step hidden states
            ],
        ),
        compiler_params=pltpu.CompilerParams(
            dimension_semantics=("parallel", "arbitrary"),  # batch blocks across cores
            vmem_limit_bytes=32 * 1024 * 1024,
        ),
    )(x, wih_p, whh_p, b_comb, bhh_n, wfc_p, bfc)

    out = jnp.transpose(out_k, (0, 2, 1)).reshape(B_pad, L_pad)   # [B_pad, L_pad]
    return out[:B, :L][..., None]                                 # [B, L, 1]


def _reference_forward(oligo_read, noise, params):
    """Pure-JAX reference (same math as torch nn.GRU + Linear + LeakyReLU(0.2))."""
    x = jnp.concatenate([oligo_read, noise], axis=2).astype(jnp.float32)  # [B, L, 17]
    H = params["w_hh"].shape[1]
    w_ih, w_hh = params["w_ih"], params["w_hh"]
    b_ih, b_hh = params["b_ih"], params["b_hh"]

    def cell(h, x_t):
        gi = x_t @ w_ih.T + b_ih
        gh = h @ w_hh.T + b_hh
        r = jax.nn.sigmoid(gi[:, :H] + gh[:, :H])
        z = jax.nn.sigmoid(gi[:, H:2 * H] + gh[:, H:2 * H])
        n = jnp.tanh(gi[:, 2 * H:] + r * gh[:, 2 * H:])
        h_new = (1.0 - z) * n + z * h
        return h_new, h_new

    B = x.shape[0]
    _, hs = lax.scan(cell, jnp.zeros((B, H), jnp.float32), jnp.transpose(x, (1, 0, 2)))
    hs = jnp.transpose(hs, (1, 0, 2))                           # [B, L, H]
    # fc (mathematically identical to hs @ w_fc.T + b_fc), then LeakyReLU(0.2)
    y = (hs * params["w_fc"].reshape(1, 1, -1)).sum(-1, keepdims=True) + params["b_fc"]
    return jnp.where(y > 0, y, 0.2 * y)


def init_params(key, input_size=17, hidden_size=32):
    """Deterministic init mimicking PyTorch defaults: U(-1/sqrt(H), 1/sqrt(H))."""
    k = 1.0 / np.sqrt(hidden_size)
    keys = jax.random.split(key, 6)
    u = lambda kk, shape: jax.random.uniform(kk, shape, jnp.float32, -k, k)
    return {
        "w_ih": u(keys[0], (3 * hidden_size, input_size)),   # gate order r, z, n
        "w_hh": u(keys[1], (3 * hidden_size, hidden_size)),
        "b_ih": u(keys[2], (3 * hidden_size,)),
        "b_hh": u(keys[3], (3 * hidden_size,)),
        "w_fc": u(keys[4], (1, hidden_size)),
        "b_fc": u(keys[5], (1,)),
    }


if __name__ == "__main__":
    B, L, ONEHOT, H = 2, 8, 16, 32
    key = jax.random.PRNGKey(0)
    k_in, k_noise, k_param = jax.random.split(key, 3)

    # one-hot-ish stacked oligo + read input [B, L, 16]
    idx_o = jax.random.randint(k_in, (B, L), 0, 8)
    idx_r = jax.random.randint(jax.random.fold_in(k_in, 1), (B, L), 0, 8)
    oligo_read = jnp.concatenate(
        [jax.nn.one_hot(idx_o, 8), jax.nn.one_hot(idx_r, 8)], axis=2
    ).astype(jnp.float32)                                      # [2, 8, 16]

    # the N(0,1) noise the torch module adds as the 17th feature
    noise = jax.random.normal(k_noise, (B, L, 1), jnp.float32)

    params = init_params(k_param, input_size=ONEHOT + 1, hidden_size=H)

    fwd = jax.jit(generator_qscore_gru)
    qscore = jax.block_until_ready(fwd(oligo_read, noise, params))

    ref = _reference_forward(oligo_read, noise, params)
    assert qscore.shape == (B, L, 1)
    np.testing.assert_allclose(np.asarray(qscore), np.asarray(ref),
                               rtol=1e-4, atol=1e-4)

    print("KERNEL_OK")
</pallas_src>

<mosaic_0001>
module attributes {stable_mosaic.version = 11 : i64} {
  func.func @_gru_fc_lrelu_kernel(%arg0: i32, %arg1: i32, %arg2: memref<1x64x24xf32, #tpu.memory_space<vmem>>, %arg3: memref<24x384xf32, #tpu.memory_space<vmem>>, %arg4: memref<128x384xf32, #tpu.memory_space<vmem>>, %arg5: memref<1x384xf32, #tpu.memory_space<vmem>>, %arg6: memref<1x384xf32, #tpu.memory_space<vmem>>, %arg7: memref<1x1x128xf32, #tpu.memory_space<vmem>>, %arg8: memref<1x1xf32, #tpu.memory_space<vmem>>, %arg9: memref<1x8x8xf32, #tpu.memory_space<vmem>>, %arg10: memref<8x128xf32, #tpu.memory_space<vmem>>, %arg11: memref<64x384xf32, #tpu.memory_space<vmem>>, %arg12: memref<8x8x128xf32, #tpu.memory_space<vmem>>) attributes {dimension_semantics = [#tpu.dimension_semantics<parallel>, #tpu.dimension_semantics<arbitrary>], iteration_bounds = array<i64: 1, 1>, scalar_prefetch = 0 : i64, scratch_operands = 3 : i64, tpu.core_type = #tpu.core_type<tc>, window_params = [{transform_indices = @transform_0, window_bounds = array<i64: 1, 64, 24>}, {pipeline_mode = #tpu.pipeline_mode<synchronous>, transform_indices = @transform_1, window_bounds = array<i64: 24, 384>}, {pipeline_mode = #tpu.pipeline_mode<synchronous>, transform_indices = @transform_2, window_bounds = array<i64: 128, 384>}, {pipeline_mode = #tpu.pipeline_mode<synchronous>, transform_indices = @transform_3, window_bounds = array<i64: 1, 384>}, {pipeline_mode = #tpu.pipeline_mode<synchronous>, transform_indices = @transform_4, window_bounds = array<i64: 1, 384>}, {pipeline_mode = #tpu.pipeline_mode<synchronous>, transform_indices = @transform_5, window_bounds = array<i64: 1, 1, 128>}, {pipeline_mode = #tpu.pipeline_mode<synchronous>, transform_indices = @transform_6, window_bounds = array<i64: 1, 1>}, {transform_indices = @transform_7, window_bounds = array<i64: 1, 8, 8>}]} {
    %c0_i32 = arith.constant 0 : i32
    %0 = arith.cmpi eq, %arg1, %c0_i32 : i32
    %1 = arith.extui %0 : i1 to i32
    %c0_i32_0 = arith.constant 0 : i32
    %2 = arith.cmpi ne, %1, %c0_i32_0 : i32
    scf.if %2 {
      %cst_96 = arith.constant 0.000000e+00 : f32
      %313 = vector.broadcast %cst_96 : f32 to vector<8x128xf32>
      %c0_97 = arith.constant 0 : index
      %c0_98 = arith.constant 0 : index
      %314 = vector.load %arg10[%c0_97, %c0_98] : memref<8x128xf32, #tpu.memory_space<vmem>>, vector<8x128xf32>
      tpu.vector_store %arg10[%c0_97, %c0_98], %313 {strides = array<i32>} : memref<8x128xf32, #tpu.memory_space<vmem>>, vector<8x128xf32>,
    } else {
    }
    %c0 = arith.constant 0 : index
    %c0_1 = arith.constant 0 : index
    %c0_2 = arith.constant 0 : index
    %3 = vector.load %arg2[%c0, %c0_1, %c0_2] : memref<1x64x24xf32, #tpu.memory_space<vmem>>, vector<1x64x24xf32>
    %4 = vector.shape_cast %3 : vector<1x64x24xf32> to vector<64x24xf32>
    %c0_3 = arith.constant 0 : index
    %c0_4 = arith.constant 0 : index
    %5 = vector.load %arg3[%c0_3, %c0_4] : memref<24x384xf32, #tpu.memory_space<vmem>>, vector<24x384xf32>
    %cst = arith.constant dense<0.000000e+00> : vector<64x384xf32>
    %6 = tpu.matmul %4, %5, %cst {dimension_numbers = #tpu.dot_dimension_numbers<[1], [0], [0], [1], [0, 0, 1, 1], [], []>} : vector<64x24xf32>, vector<24x384xf32>, vector<64x384xf32> -> vector<64x384xf32>
    %c0_5 = arith.constant 0 : index
    %c0_6 = arith.constant 0 : index
    %7 = vector.load %arg5[%c0_5, %c0_6] : memref<1x384xf32, #tpu.memory_space<vmem>>, vector<1x384xf32>
    %8 = vector.broadcast %7 : vector<1x384xf32> to vector<64x384xf32>
    %9 = arith.addf %6, %8 : vector<64x384xf32>
    %c0_7 = arith.constant 0 : index
    %c0_8 = arith.constant 0 : index
    %10 = vector.load %arg11[%c0_7, %c0_8] : memref<64x384xf32, #tpu.memory_space<vmem>>, vector<64x384xf32>
    tpu.vector_store %arg11[%c0_7, %c0_8], %9 {strides = array<i32>} : memref<64x384xf32, #tpu.memory_space<vmem>>, vector<64x384xf32>,
    %c0_9 = arith.constant 0 : index
    %c0_10 = arith.constant 0 : index
    %11 = vector.load %arg4[%c0_9, %c0_10] : memref<128x384xf32, #tpu.memory_space<vmem>>, vector<128x384xf32>
    %c0_11 = arith.constant 0 : index
    %c0_12 = arith.constant 0 : index
    %12 = vector.load %arg6[%c0_11, %c0_12] : memref<1x384xf32, #tpu.memory_space<vmem>>, vector<1x384xf32>
    %13 = vector.shape_cast %12 : vector<1x384xf32> to vector<1x384xf32>
    %14 = vector.broadcast %13 : vector<1x384xf32> to vector<8x384xf32>
    %c0_13 = arith.constant 0 : index
    %c0_14 = arith.constant 0 : index
    %15 = vector.load %arg10[%c0_13, %c0_14] : memref<8x128xf32, #tpu.memory_space<vmem>>, vector<8x128xf32>
    %c0_i32_15 = arith.constant 0 : i32
    %c8_i32 = arith.constant 8 : i32
    %16 = arith.muli %c0_i32_15, %c8_i32 : i32
    %17 = arith.index_cast %16 : i32 to index
    %c0_16 = arith.constant 0 : index
    %18 = vector.load %arg11[%17, %c0_16] : memref<64x384xf32, #tpu.memory_space<vmem>>, vector<8x384xf32>
    %cst_17 = arith.constant dense<0.000000e+00> : vector<8x384xf32>
    %19 = tpu.matmul %15, %11, %cst_17 {dimension_numbers = #tpu.dot_dimension_numbers<[1], [0], [0], [1], [0, 0, 1, 1], [], []>} : vector<8x128xf32>, vector<128x384xf32>, vector<8x384xf32> -> vector<8x384xf32>
    %20 = arith.addf %19, %14 : vector<8x384xf32>
    %21 = vector.extract_strided_slice %18 {offsets = [0, 0], sizes = [8, 128], strides = [1, 1]} : vector<8x384xf32> to vector<8x128xf32>
    %22 = vector.extract_strided_slice %20 {offsets = [0, 0], sizes = [8, 128], strides = [1, 1]} : vector<8x384xf32> to vector<8x128xf32>
    %23 = arith.addf %21, %22 : vector<8x128xf32>
    %24 = arith.negf %23 : vector<8x128xf32>
    %25 = math.exp %24 : vector<8x128xf32>
    %cst_18 = arith.constant 1.000000e+00 : f32
    %26 = vector.broadcast %cst_18 : f32 to vector<8x128xf32>
    %27 = arith.addf %26, %25 : vector<8x128xf32>
    %28 = arith.divf %26, %27 : vector<8x128xf32>
    %29 = vector.extract_strided_slice %18 {offsets = [0, 128], sizes = [8, 128], strides = [1, 1]} : vector<8x384xf32> to vector<8x128xf32>
    %30 = vector.extract_strided_slice %20 {offsets = [0, 128], sizes = [8, 128], strides = [1, 1]} : vector<8x384xf32> to vector<8x128xf32>
    %31 = arith.addf %29, %30 : vector<8x128xf32>
    %32 = arith.negf %31 : vector<8x128xf32>
    %33 = math.exp %32 : vector<8x128xf32>
    %cst_19 = arith.constant 1.000000e+00 : f32
    %34 = vector.broadcast %cst_19 : f32 to vector<8x128xf32>
    %35 = arith.addf %34, %33 : vector<8x128xf32>
    %36 = arith.divf %34, %35 : vector<8x128xf32>
    %37 = vector.extract_strided_slice %18 {offsets = [0, 256], sizes = [8, 128], strides = [1, 1]} : vector<8x384xf32> to vector<8x128xf32>
    %38 = vector.extract_strided_slice %20 {offsets = [0, 256], sizes = [8, 128], strides = [1, 1]} : vector<8x384xf32> to vector<8x128xf32>
    %39 = arith.mulf %28, %38 : vector<8x128xf32>
    %40 = arith.addf %37, %39 : vector<8x128xf32>
    %41 = math.tanh %40 : vector<8x128xf32>
    %cst_20 = arith.constant 1.000000e+00 : f32
    %42 = vector.broadcast %cst_20 : f32 to vector<8x128xf32>
    %43 = arith.subf %42, %36 : vector<8x128xf32>
    %44 = arith.mulf %43, %41 : vector<8x128xf32>
    %45 = arith.mulf %36, %15 : vector<8x128xf32>
    %46 = arith.addf %44, %45 : vector<8x128xf32>
    %47 = arith.index_cast %c0_i32_15 : i32 to index
    %c0_21 = arith.constant 0 : index
    %c0_22 = arith.constant 0 : index
    %48 = vector.load %arg12[%47, %c0_21, %c0_22] : memref<8x8x128xf32, #tpu.memory_space<vmem>>, vector<1x8x128xf32>
    %49 = vector.shape_cast %48 : vector<1x8x128xf32> to vector<8x128xf32>
    %50 = vector.shape_cast %46 : vector<8x128xf32> to vector<1x8x128xf32>
    tpu.vector_store %arg12[%47, %c0_21, %c0_22], %50 {strides = array<i32>} : memref<8x8x128xf32, #tpu.memory_space<vmem>>, vector<1x8x128xf32>,
    %c1_i32 = arith.constant 1 : i32
    %c8_i32_23 = arith.constant 8 : i32
    %51 = arith.muli %c1_i32, %c8_i32_23 : i32
    %52 = arith.index_cast %51 : i32 to index
    %c0_24 = arith.constant 0 : index
    %53 = vector.load %arg11[%52, %c0_24] : memref<64x384xf32, #tpu.memory_space<vmem>>, vector<8x384xf32>
    %cst_25 = arith.constant dense<0.000000e+00> : vector<8x384xf32>
    %54 = tpu.matmul %46, %11, %cst_25 {dimension_numbers = #tpu.dot_dimension_numbers<[1], [0], [0], [1], [0, 0, 1, 1], [], []>} : vector<8x128xf32>, vector<128x384xf32>, vector<8x384xf32> -> vector<8x384xf32>
    %55 = arith.addf %54, %14 : vector<8x384xf32>
    %56 = vector.extract_strided_slice %53 {offsets = [0, 0], sizes = [8, 128], strides = [1, 1]} : vector<8x384xf32> to vector<8x128xf32>
    %57 = vector.extract_strided_slice %55 {offsets = [0, 0], sizes = [8, 128], strides = [1, 1]} : vector<8x384xf32> to vector<8x128xf32>
    %58 = arith.addf %56, %57 : vector<8x128xf32>
    %59 = arith.negf %58 : vector<8x128xf32>
    %60 = math.exp %59 : vector<8x128xf32>
    %cst_26 = arith.constant 1.000000e+00 : f32
    %61 = vector.broadcast %cst_26 : f32 to vector<8x128xf32>
    %62 = arith.addf %61, %60 : vector<8x128xf32>
    %63 = arith.divf %61, %62 : vector<8x128xf32>
    %64 = vector.extract_strided_slice %53 {offsets = [0, 128], sizes = [8, 128], strides = [1, 1]} : vector<8x384xf32> to vector<8x128xf32>
    %65 = vector.extract_strided_slice %55 {offsets = [0, 128], sizes = [8, 128], strides = [1, 1]} : vector<8x384xf32> to vector<8x128xf32>
    %66 = arith.addf %64, %65 : vector<8x128xf32>
    %67 = arith.negf %66 : vector<8x128xf32>
    %68 = math.exp %67 : vector<8x128xf32>
    %cst_27 = arith.constant 1.000000e+00 : f32
    %69 = vector.broadcast %cst_27 : f32 to vector<8x128xf32>
    %70 = arith.addf %69, %68 : vector<8x128xf32>
    %71 = arith.divf %69, %70 : vector<8x128xf32>
    %72 = vector.extract_strided_slice %53 {offsets = [0, 256], sizes = [8, 128], strides = [1, 1]} : vector<8x384xf32> to vector<8x128xf32>
    %73 = vector.extract_strided_slice %55 {offsets = [0, 256], sizes = [8, 128], strides = [1, 1]} : vector<8x384xf32> to vector<8x128xf32>
    %74 = arith.mulf %63, %73 : vector<8x128xf32>
    %75 = arith.addf %72, %74 : vector<8x128xf32>
    %76 = math.tanh %75 : vector<8x128xf32>
    %cst_28 = arith.constant 1.000000e+00 : f32
    %77 = vector.broadcast %cst_28 : f32 to vector<8x128xf32>
    %78 = arith.subf %77, %71 : vector<8x128xf32>
    %79 = arith.mulf %78, %76 : vector<8x128xf32>
    %80 = arith.mulf %71, %46 : vector<8x128xf32>
    %81 = arith.addf %79, %80 : vector<8x128xf32>
    %82 = arith.index_cast %c1_i32 : i32 to index
    %c0_29 = arith.constant 0 : index
    %c0_30 = arith.constant 0 : index
    %83 = vector.load %arg12[%82, %c0_29, %c0_30] : memref<8x8x128xf32, #tpu.memory_space<vmem>>, vector<1x8x128xf32>
    %84 = vector.shape_cast %83 : vector<1x8x128xf32> to vector<8x128xf32>
    %85 = vector.shape_cast %81 : vector<8x128xf32> to vector<1x8x128xf32>
    tpu.vector_store %arg12[%82, %c0_29, %c0_30], %85 {strides = array<i32>} : memref<8x8x128xf32, #tpu.memory_space<vmem>>, vector<1x8x128xf32>,
    %c2_i32 = arith.constant 2 : i32
    %c8_i32_31 = arith.constant 8 : i32
    %86 = arith.muli %c2_i32, %c8_i32_31 : i32
    %87 = arith.index_cast %86 : i32 to index
    %c0_32 = arith.constant 0 : index
    %88 = vector.load %arg11[%87, %c0_32] : memref<64x384xf32, #tpu.memory_space<vmem>>, vector<8x384xf32>
    %cst_33 = arith.constant dense<0.000000e+00> : vector<8x384xf32>
    %89 = tpu.matmul %81, %11, %cst_33 {dimension_numbers = #tpu.dot_dimension_numbers<[1], [0], [0], [1], [0, 0, 1, 1], [], []>} : vector<8x128xf32>, vector<128x384xf32>, vector<8x384xf32> -> vector<8x384xf32>
    %90 = arith.addf %89, %14 : vector<8x384xf32>
    %91 = vector.extract_strided_slice %88 {offsets = [0, 0], sizes = [8, 128], strides = [1, 1]} : vector<8x384xf32> to vector<8x128xf32>
    %92 = vector.extract_strided_slice %90 {offsets = [0, 0], sizes = [8, 128], strides = [1, 1]} : vector<8x384xf32> to vector<8x128xf32>
    %93 = arith.addf %91, %92 : vector<8x128xf32>
    %94 = arith.negf %93 : vector<8x128xf32>
    %95 = math.exp %94 : vector<8x128xf32>
    %cst_34 = arith.constant 1.000000e+00 : f32
    %96 = vector.broadcast %cst_34 : f32 to vector<8x128xf32>
    %97 = arith.addf %96, %95 : vector<8x128xf32>
    %98 = arith.divf %96, %97 : vector<8x128xf32>
    %99 = vector.extract_strided_slice %88 {offsets = [0, 128], sizes = [8, 128], strides = [1, 1]} : vector<8x384xf32> to vector<8x128xf32>
    %100 = vector.extract_strided_slice %90 {offsets = [0, 128], sizes = [8, 128], strides = [1, 1]} : vector<8x384xf32> to vector<8x128xf32>
    %101 = arith.addf %99, %100 : vector<8x128xf32>
    %102 = arith.negf %101 : vector<8x128xf32>
    %103 = math.exp %102 : vector<8x128xf32>
    %cst_35 = arith.constant 1.000000e+00 : f32
    %104 = vector.broadcast %cst_35 : f32 to vector<8x128xf32>
    %105 = arith.addf %104, %103 : vector<8x128xf32>
    %106 = arith.divf %104, %105 : vector<8x128xf32>
    %107 = vector.extract_strided_slice %88 {offsets = [0, 256], sizes = [8, 128], strides = [1, 1]} : vector<8x384xf32> to vector<8x128xf32>
    %108 = vector.extract_strided_slice %90 {offsets = [0, 256], sizes = [8, 128], strides = [1, 1]} : vector<8x384xf32> to vector<8x128xf32>
    %109 = arith.mulf %98, %108 : vector<8x128xf32>
    %110 = arith.addf %107, %109 : vector<8x128xf32>
    %111 = math.tanh %110 : vector<8x128xf32>
    %cst_36 = arith.constant 1.000000e+00 : f32
    %112 = vector.broadcast %cst_36 : f32 to vector<8x128xf32>
    %113 = arith.subf %112, %106 : vector<8x128xf32>
    %114 = arith.mulf %113, %111 : vector<8x128xf32>
    %115 = arith.mulf %106, %81 : vector<8x128xf32>
    %116 = arith.addf %114, %115 : vector<8x128xf32>
    %117 = arith.index_cast %c2_i32 : i32 to index
    %c0_37 = arith.constant 0 : index
    %c0_38 = arith.constant 0 : index
    %118 = vector.load %arg12[%117, %c0_37, %c0_38] : memref<8x8x128xf32, #tpu.memory_space<vmem>>, vector<1x8x128xf32>
    %119 = vector.shape_cast %118 : vector<1x8x128xf32> to vector<8x128xf32>
    %120 = vector.shape_cast %116 : vector<8x128xf32> to vector<1x8x128xf32>
    tpu.vector_store %arg12[%117, %c0_37, %c0_38], %120 {strides = array<i32>} : memref<8x8x128xf32, #tpu.memory_space<vmem>>, vector<1x8x128xf32>,
    %c3_i32 = arith.constant 3 : i32
    %c8_i32_39 = arith.constant 8 : i32
    %121 = arith.muli %c3_i32, %c8_i32_39 : i32
    %122 = arith.index_cast %121 : i32 to index
    %c0_40 = arith.constant 0 : index
    %123 = vector.load %arg11[%122, %c0_40] : memref<64x384xf32, #tpu.memory_space<vmem>>, vector<8x384xf32>
    %cst_41 = arith.constant dense<0.000000e+00> : vector<8x384xf32>
    %124 = tpu.matmul %116, %11, %cst_41 {dimension_numbers = #tpu.dot_dimension_numbers<[1], [0], [0], [1], [0, 0, 1, 1], [], []>} : vector<8x128xf32>, vector<128x384xf32>, vector<8x384xf32> -> vector<8x384xf32>
    %125 = arith.addf %124, %14 : vector<8x384xf32>
    %126 = vector.extract_strided_slice %123 {offsets = [0, 0], sizes = [8, 128], strides = [1, 1]} : vector<8x384xf32> to vector<8x128xf32>
    %127 = vector.extract_strided_slice %125 {offsets = [0, 0], sizes = [8, 128], strides = [1, 1]} : vector<8x384xf32> to vector<8x128xf32>
    %128 = arith.addf %126, %127 : vector<8x128xf32>
    %129 = arith.negf %128 : vector<8x128xf32>
    %130 = math.exp %129 : vector<8x128xf32>
    %cst_42 = arith.constant 1.000000e+00 : f32
    %131 = vector.broadcast %cst_42 : f32 to vector<8x128xf32>
    %132 = arith.addf %131, %130 : vector<8x128xf32>
    %133 = arith.divf %131, %132 : vector<8x128xf32>
    %134 = vector.extract_strided_slice %123 {offsets = [0, 128], sizes = [8, 128], strides = [1, 1]} : vector<8x384xf32> to vector<8x128xf32>
    %135 = vector.extract_strided_slice %125 {offsets = [0, 128], sizes = [8, 128], strides = [1, 1]} : vector<8x384xf32> to vector<8x128xf32>
    %136 = arith.addf %134, %135 : vector<8x128xf32>
    %137 = arith.negf %136 : vector<8x128xf32>
    %138 = math.exp %137 : vector<8x128xf32>
    %cst_43 = arith.constant 1.000000e+00 : f32
    %139 = vector.broadcast %cst_43 : f32 to vector<8x128xf32>
    %140 = arith.addf %139, %138 : vector<8x128xf32>
    %141 = arith.divf %139, %140 : vector<8x128xf32>
    %142 = vector.extract_strided_slice %123 {offsets = [0, 256], sizes = [8, 128], strides = [1, 1]} : vector<8x384xf32> to vector<8x128xf32>
    %143 = vector.extract_strided_slice %125 {offsets = [0, 256], sizes = [8, 128], strides = [1, 1]} : vector<8x384xf32> to vector<8x128xf32>
    %144 = arith.mulf %133, %143 : vector<8x128xf32>
    %145 = arith.addf %142, %144 : vector<8x128xf32>
    %146 = math.tanh %145 : vector<8x128xf32>
    %cst_44 = arith.constant 1.000000e+00 : f32
    %147 = vector.broadcast %cst_44 : f32 to vector<8x128xf32>
    %148 = arith.subf %147, %141 : vector<8x128xf32>
    %149 = arith.mulf %148, %146 : vector<8x128xf32>
    %150 = arith.mulf %141, %116 : vector<8x128xf32>
    %151 = arith.addf %149, %150 : vector<8x128xf32>
    %152 = arith.index_cast %c3_i32 : i32 to index
    %c0_45 = arith.constant 0 : index
    %c0_46 = arith.constant 0 : index
    %153 = vector.load %arg12[%152, %c0_45, %c0_46] : memref<8x8x128xf32, #tpu.memory_space<vmem>>, vector<1x8x128xf32>
    %154 = vector.shape_cast %153 : vector<1x8x128xf32> to vector<8x128xf32>
    %155 = vector.shape_cast %151 : vector<8x128xf32> to vector<1x8x128xf32>
    tpu.vector_store %arg12[%152, %c0_45, %c0_46], %155 {strides = array<i32>} : memref<8x8x128xf32, #tpu.memory_space<vmem>>, vector<1x8x128xf32>,
    %c4_i32 = arith.constant 4 : i32
    %c8_i32_47 = arith.constant 8 : i32
    %156 = arith.muli %c4_i32, %c8_i32_47 : i32
    %157 = arith.index_cast %156 : i32 to index
    %c0_48 = arith.constant 0 : index
    %158 = vector.load %arg11[%157, %c0_48] : memref<64x384xf32, #tpu.memory_space<vmem>>, vector<8x384xf32>
    %cst_49 = arith.constant dense<0.000000e+00> : vector<8x384xf32>
    %159 = tpu.matmul %151, %11, %cst_49 {dimension_numbers = #tpu.dot_dimension_numbers<[1], [0], [0], [1], [0, 0, 1, 1], [], []>} : vector<8x128xf32>, vector<128x384xf32>, vector<8x384xf32> -> vector<8x384xf32>
    %160 = arith.addf %159, %14 : vector<8x384xf32>
    %161 = vector.extract_strided_slice %158 {offsets = [0, 0], sizes = [8, 128], strides = [1, 1]} : vector<8x384xf32> to vector<8x128xf32>
    %162 = vector.extract_strided_slice %160 {offsets = [0, 0], sizes = [8, 128], strides = [1, 1]} : vector<8x384xf32> to vector<8x128xf32>
    %163 = arith.addf %161, %162 : vector<8x128xf32>
    %164 = arith.negf %163 : vector<8x128xf32>
    %165 = math.exp %164 : vector<8x128xf32>
    %cst_50 = arith.constant 1.000000e+00 : f32
    %166 = vector.broadcast %cst_50 : f32 to vector<8x128xf32>
    %167 = arith.addf %166, %165 : vector<8x128xf32>
    %168 = arith.divf %166, %167 : vector<8x128xf32>
    %169 = vector.extract_strided_slice %158 {offsets = [0, 128], sizes = [8, 128], strides = [1, 1]} : vector<8x384xf32> to vector<8x128xf32>
    %170 = vector.extract_strided_slice %160 {offsets = [0, 128], sizes = [8, 128], strides = [1, 1]} : vector<8x384xf32> to vector<8x128xf32>
    %171 = arith.addf %169, %170 : vector<8x128xf32>
    %172 = arith.negf %171 : vector<8x128xf32>
    %173 = math.exp %172 : vector<8x128xf32>
    %cst_51 = arith.constant 1.000000e+00 : f32
    %174 = vector.broadcast %cst_51 : f32 to vector<8x128xf32>
    %175 = arith.addf %174, %173 : vector<8x128xf32>
    %176 = arith.divf %174, %175 : vector<8x128xf32>
    %177 = vector.extract_strided_slice %158 {offsets = [0, 256], sizes = [8, 128], strides = [1, 1]} : vector<8x384xf32> to vector<8x128xf32>
    %178 = vector.extract_strided_slice %160 {offsets = [0, 256], sizes = [8, 128], strides = [1, 1]} : vector<8x384xf32> to vector<8x128xf32>
    %179 = arith.mulf %168, %178 : vector<8x128xf32>
    %180 = arith.addf %177, %179 : vector<8x128xf32>
    %181 = math.tanh %180 : vector<8x128xf32>
    %cst_52 = arith.constant 1.000000e+00 : f32
    %182 = vector.broadcast %cst_52 : f32 to vector<8x128xf32>
    %183 = arith.subf %182, %176 : vector<8x128xf32>
    %184 = arith.mulf %183, %181 : vector<8x128xf32>
    %185 = arith.mulf %176, %151 : vector<8x128xf32>
    %186 = arith.addf %184, %185 : vector<8x128xf32>
    %187 = arith.index_cast %c4_i32 : i32 to index
    %c0_53 = arith.constant 0 : index
    %c0_54 = arith.constant 0 : index
    %188 = vector.load %arg12[%187, %c0_53, %c0_54] : memref<8x8x128xf32, #tpu.memory_space<vmem>>, vector<1x8x128xf32>
    %189 = vector.shape_cast %188 : vector<1x8x128xf32> to vector<8x128xf32>
    %190 = vector.shape_cast %186 : vector<8x128xf32> to vector<1x8x128xf32>
    tpu.vector_store %arg12[%187, %c0_53, %c0_54], %190 {strides = array<i32>} : memref<8x8x128xf32, #tpu.memory_space<vmem>>, vector<1x8x128xf32>,
    %c5_i32 = arith.constant 5 : i32
    %c8_i32_55 = arith.constant 8 : i32
    %191 = arith.muli %c5_i32, %c8_i32_55 : i32
    %192 = arith.index_cast %191 : i32 to index
    %c0_56 = arith.constant 0 : index
    %193 = vector.load %arg11[%192, %c0_56] : memref<64x384xf32, #tpu.memory_space<vmem>>, vector<8x384xf32>
    %cst_57 = arith.constant dense<0.000000e+00> : vector<8x384xf32>
    %194 = tpu.matmul %186, %11, %cst_57 {dimension_numbers = #tpu.dot_dimension_numbers<[1], [0], [0], [1], [0, 0, 1, 1], [], []>} : vector<8x128xf32>, vector<128x384xf32>, vector<8x384xf32> -> vector<8x384xf32>
    %195 = arith.addf %194, %14 : vector<8x384xf32>
    %196 = vector.extract_strided_slice %193 {offsets = [0, 0], sizes = [8, 128], strides = [1, 1]} : vector<8x384xf32> to vector<8x128xf32>
    %197 = vector.extract_strided_slice %195 {offsets = [0, 0], sizes = [8, 128], strides = [1, 1]} : vector<8x384xf32> to vector<8x128xf32>
    %198 = arith.addf %196, %197 : vector<8x128xf32>
    %199 = arith.negf %198 : vector<8x128xf32>
    %200 = math.exp %199 : vector<8x128xf32>
    %cst_58 = arith.constant 1.000000e+00 : f32
    %201 = vector.broadcast %cst_58 : f32 to vector<8x128xf32>
    %202 = arith.addf %201, %200 : vector<8x128xf32>
    %203 = arith.divf %201, %202 : vector<8x128xf32>
    %204 = vector.extract_strided_slice %193 {offsets = [0, 128], sizes = [8, 128], strides = [1, 1]} : vector<8x384xf32> to vector<8x128xf32>
    %205 = vector.extract_strided_slice %195 {offsets = [0, 128], sizes = [8, 128], strides = [1, 1]} : vector<8x384xf32> to vector<8x128xf32>
    %206 = arith.addf %204, %205 : vector<8x128xf32>
    %207 = arith.negf %206 : vector<8x128xf32>
    %208 = math.exp %207 : vector<8x128xf32>
    %cst_59 = arith.constant 1.000000e+00 : f32
    %209 = vector.broadcast %cst_59 : f32 to vector<8x128xf32>
    %210 = arith.addf %209, %208 : vector<8x128xf32>
    %211 = arith.divf %209, %210 : vector<8x128xf32>
    %212 = vector.extract_strided_slice %193 {offsets = [0, 256], sizes = [8, 128], strides = [1, 1]} : vector<8x384xf32> to vector<8x128xf32>
    %213 = vector.extract_strided_slice %195 {offsets = [0, 256], sizes = [8, 128], strides = [1, 1]} : vector<8x384xf32> to vector<8x128xf32>
    %214 = arith.mulf %203, %213 : vector<8x128xf32>
    %215 = arith.addf %212, %214 : vector<8x128xf32>
    %216 = math.tanh %215 : vector<8x128xf32>
    %cst_60 = arith.constant 1.000000e+00 : f32
    %217 = vector.broadcast %cst_60 : f32 to vector<8x128xf32>
    %218 = arith.subf %217, %211 : vector<8x128xf32>
    %219 = arith.mulf %218, %216 : vector<8x128xf32>
    %220 = arith.mulf %211, %186 : vector<8x128xf32>
    %221 = arith.addf %219, %220 : vector<8x128xf32>
    %222 = arith.index_cast %c5_i32 : i32 to index
    %c0_61 = arith.constant 0 : index
    %c0_62 = arith.constant 0 : index
    %223 = vector.load %arg12[%222, %c0_61, %c0_62] : memref<8x8x128xf32, #tpu.memory_space<vmem>>, vector<1x8x128xf32>
    %224 = vector.shape_cast %223 : vector<1x8x128xf32> to vector<8x128xf32>
    %225 = vector.shape_cast %221 : vector<8x128xf32> to vector<1x8x128xf32>
    tpu.vector_store %arg12[%222, %c0_61, %c0_62], %225 {strides = array<i32>} : memref<8x8x128xf32, #tpu.memory_space<vmem>>, vector<1x8x128xf32>,
    %c6_i32 = arith.constant 6 : i32
    %c8_i32_63 = arith.constant 8 : i32
    %226 = arith.muli %c6_i32, %c8_i32_63 : i32
    %227 = arith.index_cast %226 : i32 to index
    %c0_64 = arith.constant 0 : index
    %228 = vector.load %arg11[%227, %c0_64] : memref<64x384xf32, #tpu.memory_space<vmem>>, vector<8x384xf32>
    %cst_65 = arith.constant dense<0.000000e+00> : vector<8x384xf32>
    %229 = tpu.matmul %221, %11, %cst_65 {dimension_numbers = #tpu.dot_dimension_numbers<[1], [0], [0], [1], [0, 0, 1, 1], [], []>} : vector<8x128xf32>, vector<128x384xf32>, vector<8x384xf32> -> vector<8x384xf32>
    %230 = arith.addf %229, %14 : vector<8x384xf32>
    %231 = vector.extract_strided_slice %228 {offsets = [0, 0], sizes = [8, 128], strides = [1, 1]} : vector<8x384xf32> to vector<8x128xf32>
    %232 = vector.extract_strided_slice %230 {offsets = [0, 0], sizes = [8, 128], strides = [1, 1]} : vector<8x384xf32> to vector<8x128xf32>
    %233 = arith.addf %231, %232 : vector<8x128xf32>
    %234 = arith.negf %233 : vector<8x128xf32>
    %235 = math.exp %234 : vector<8x128xf32>
    %cst_66 = arith.constant 1.000000e+00 : f32
    %236 = vector.broadcast %cst_66 : f32 to vector<8x128xf32>
    %237 = arith.addf %236, %235 : vector<8x128xf32>
    %238 = arith.divf %236, %237 : vector<8x128xf32>
    %239 = vector.extract_strided_slice %228 {offsets = [0, 128], sizes = [8, 128], strides = [1, 1]} : vector<8x384xf32> to vector<8x128xf32>
    %240 = vector.extract_strided_slice %230 {offsets = [0, 128], sizes = [8, 128], strides = [1, 1]} : vector<8x384xf32> to vector<8x128xf32>
    %241 = arith.addf %239, %240 : vector<8x128xf32>
    %242 = arith.negf %241 : vector<8x128xf32>
    %243 = math.exp %242 : vector<8x128xf32>
    %cst_67 = arith.constant 1.000000e+00 : f32
    %244 = vector.broadcast %cst_67 : f32 to vector<8x128xf32>
    %245 = arith.addf %244, %243 : vector<8x128xf32>
    %246 = arith.divf %244, %245 : vector<8x128xf32>
    %247 = vector.extract_strided_slice %228 {offsets = [0, 256], sizes = [8, 128], strides = [1, 1]} : vector<8x384xf32> to vector<8x128xf32>
    %248 = vector.extract_strided_slice %230 {offsets = [0, 256], sizes = [8, 128], strides = [1, 1]} : vector<8x384xf32> to vector<8x128xf32>
    %249 = arith.mulf %238, %248 : vector<8x128xf32>
    %250 = arith.addf %247, %249 : vector<8x128xf32>
    %251 = math.tanh %250 : vector<8x128xf32>
    %cst_68 = arith.constant 1.000000e+00 : f32
    %252 = vector.broadcast %cst_68 : f32 to vector<8x128xf32>
    %253 = arith.subf %252, %246 : vector<8x128xf32>
    %254 = arith.mulf %253, %251 : vector<8x128xf32>
    %255 = arith.mulf %246, %221 : vector<8x128xf32>
    %256 = arith.addf %254, %255 : vector<8x128xf32>
    %257 = arith.index_cast %c6_i32 : i32 to index
    %c0_69 = arith.constant 0 : index
    %c0_70 = arith.constant 0 : index
    %258 = vector.load %arg12[%257, %c0_69, %c0_70] : memref<8x8x128xf32, #tpu.memory_space<vmem>>, vector<1x8x128xf32>
    %259 = vector.shape_cast %258 : vector<1x8x128xf32> to vector<8x128xf32>
    %260 = vector.shape_cast %256 : vector<8x128xf32> to vector<1x8x128xf32>
    tpu.vector_store %arg12[%257, %c0_69, %c0_70], %260 {strides = array<i32>} : memref<8x8x128xf32, #tpu.memory_space<vmem>>, vector<1x8x128xf32>,
    %c7_i32 = arith.constant 7 : i32
    %c8_i32_71 = arith.constant 8 : i32
    %261 = arith.muli %c7_i32, %c8_i32_71 : i32
    %262 = arith.index_cast %261 : i32 to index
    %c0_72 = arith.constant 0 : index
    %263 = vector.load %arg11[%262, %c0_72] : memref<64x384xf32, #tpu.memory_space<vmem>>, vector<8x384xf32>
    %cst_73 = arith.constant dense<0.000000e+00> : vector<8x384xf32>
    %264 = tpu.matmul %256, %11, %cst_73 {dimension_numbers = #tpu.dot_dimension_numbers<[1], [0], [0], [1], [0, 0, 1, 1], [], []>} : vector<8x128xf32>, vector<128x384xf32>, vector<8x384xf32> -> vector<8x384xf32>
    %265 = arith.addf %264, %14 : vector<8x384xf32>
    %266 = vector.extract_strided_slice %263 {offsets = [0, 0], sizes = [8, 128], strides = [1, 1]} : vector<8x384xf32> to vector<8x128xf32>
    %267 = vector.extract_strided_slice %265 {offsets = [0, 0], sizes = [8, 128], strides = [1, 1]} : vector<8x384xf32> to vector<8x128xf32>
    %268 = arith.addf %266, %267 : vector<8x128xf32>
    %269 = arith.negf %268 : vector<8x128xf32>
    %270 = math.exp %269 : vector<8x128xf32>
    %cst_74 = arith.constant 1.000000e+00 : f32
    %271 = vector.broadcast %cst_74 : f32 to vector<8x128xf32>
    %272 = arith.addf %271, %270 : vector<8x128xf32>
    %273 = arith.divf %271, %272 : vector<8x128xf32>
    %274 = vector.extract_strided_slice %263 {offsets = [0, 128], sizes = [8, 128], strides = [1, 1]} : vector<8x384xf32> to vector<8x128xf32>
    %275 = vector.extract_strided_slice %265 {offsets = [0, 128], sizes = [8, 128], strides = [1, 1]} : vector<8x384xf32> to vector<8x128xf32>
    %276 = arith.addf %274, %275 : vector<8x128xf32>
    %277 = arith.negf %276 : vector<8x128xf32>
    %278 = math.exp %277 : vector<8x128xf32>
    %cst_75 = arith.constant 1.000000e+00 : f32
    %279 = vector.broadcast %cst_75 : f32 to vector<8x128xf32>
    %280 = arith.addf %279, %278 : vector<8x128xf32>
    %281 = arith.divf %279, %280 : vector<8x128xf32>
    %282 = vector.extract_strided_slice %263 {offsets = [0, 256], sizes = [8, 128], strides = [1, 1]} : vector<8x384xf32> to vector<8x128xf32>
    %283 = vector.extract_strided_slice %265 {offsets = [0, 256], sizes = [8, 128], strides = [1, 1]} : vector<8x384xf32> to vector<8x128xf32>
    %284 = arith.mulf %273, %283 : vector<8x128xf32>
    %285 = arith.addf %282, %284 : vector<8x128xf32>
    %286 = math.tanh %285 : vector<8x128xf32>
    %cst_76 = arith.constant 1.000000e+00 : f32
    %287 = vector.broadcast %cst_76 : f32 to vector<8x128xf32>
    %288 = arith.subf %287, %281 : vector<8x128xf32>
    %289 = arith.mulf %288, %286 : vector<8x128xf32>
    %290 = arith.mulf %281, %256 : vector<8x128xf32>
    %291 = arith.addf %289, %290 : vector<8x128xf32>
    %292 = arith.index_cast %c7_i32 : i32 to index
    %c0_77 = arith.constant 0 : index
    %c0_78 = arith.constant 0 : index
    %293 = vector.load %arg12[%292, %c0_77, %c0_78] : memref<8x8x128xf32, #tpu.memory_space<vmem>>, vector<1x8x128xf32>
    %294 = vector.shape_cast %293 : vector<1x8x128xf32> to vector<8x128xf32>
    %295 = vector.shape_cast %291 : vector<8x128xf32> to vector<1x8x128xf32>
    tpu.vector_store %arg12[%292, %c0_77, %c0_78], %295 {strides = array<i32>} : memref<8x8x128xf32, #tpu.memory_space<vmem>>, vector<1x8x128xf32>,
    %c8_i32_79 = arith.constant 8 : i32
    %c0_80 = arith.constant 0 : index
    %c0_81 = arith.constant 0 : index
    %296 = vector.load %arg10[%c0_80, %c0_81] : memref<8x128xf32, #tpu.memory_space<vmem>>, vector<8x128xf32>
    tpu.vector_store %arg10[%c0_80, %c0_81], %291 {strides = array<i32>} : memref<8x128xf32, #tpu.memory_space<vmem>>, vector<8x128xf32>,
    %c0_82 = arith.constant 0 : index
    %c0_83 = arith.constant 0 : index
    %c0_84 = arith.constant 0 : index
    %297 = vector.load %arg12[%c0_82, %c0_83, %c0_84] : memref<8x8x128xf32, #tpu.memory_space<vmem>>, vector<8x8x128xf32>
    %c0_85 = arith.constant 0 : index
    %c0_86 = arith.constant 0 : index
    %c0_87 = arith.constant 0 : index
    %298 = vector.load %arg7[%c0_85, %c0_86, %c0_87] : memref<1x1x128xf32, #tpu.memory_space<vmem>>, vector<1x1x128xf32>
    %299 = vector.broadcast %298 : vector<1x1x128xf32> to vector<8x8x128xf32>
    %300 = arith.mulf %297, %299 : vector<8x8x128xf32>
    %cst_88 = arith.constant dense<0.000000e+00> : vector<8x8xf32>
    %301 = vector.multi_reduction <add>, %300, %cst_88 [2] : vector<8x8x128xf32> to vector<8x8xf32>
    %c0_89 = arith.constant 0 : index
    %c0_90 = arith.constant 0 : index
    %302 = vector.load %arg8[%c0_89, %c0_90] : memref<1x1xf32, #tpu.memory_space<vmem>>, vector<1x1xf32>
    %303 = vector.broadcast %302 : vector<1x1xf32> to vector<8x8xf32>
    %304 = arith.addf %301, %303 : vector<8x8xf32>
    %cst_91 = arith.constant 0.000000e+00 : f32
    %305 = vector.broadcast %cst_91 : f32 to vector<8x8xf32>
    %306 = arith.cmpf ogt, %304, %305 : vector<8x8xf32>
    %cst_92 = arith.constant 2.000000e-01 : f32
    %307 = vector.broadcast %cst_92 : f32 to vector<8x8xf32>
    %308 = arith.mulf %307, %304 : vector<8x8xf32>
    %309 = arith.select %306, %304, %308 : vector<8x8xi1>, vector<8x8xf32>
    %c0_93 = arith.constant 0 : index
    %c0_94 = arith.constant 0 : index
    %c0_95 = arith.constant 0 : index
    %310 = vector.load %arg9[%c0_93, %c0_94, %c0_95] : memref<1x8x8xf32, #tpu.memory_space<vmem>>, vector<1x8x8xf32>
    %311 = vector.shape_cast %310 : vector<1x8x8xf32> to vector<8x8xf32>
    %312 = vector.shape_cast %309 : vector<8x8xf32> to vector<1x8x8xf32>
    tpu.vector_store %arg9[%c0_93, %c0_94, %c0_95], %312 {strides = array<i32>} : memref<1x8x8xf32, #tpu.memory_space<vmem>>, vector<1x8x8xf32>,
    return
  }
  func.func @transform_0(%arg0: i32, %arg1: i32) -> (i32, i32, i32) {
    %c0_i32 = arith.constant 0 : i32
    %c0_i32_0 = arith.constant 0 : i32
    return %arg0, %arg1, %c0_i32 : i32, i32, i32
  }
  func.func @transform_1(%arg0: i32, %arg1: i32) -> (i32, i32) {
    %c0_i32 = arith.constant 0 : i32
    %c0_i32_0 = arith.constant 0 : i32
    %c0_i32_1 = arith.constant 0 : i32
    return %c0_i32, %c0_i32_0 : i32, i32
  }
  func.func @transform_2(%arg0: i32, %arg1: i32) -> (i32, i32) {
    %c0_i32 = arith.constant 0 : i32
    %c0_i32_0 = arith.constant 0 : i32
    %c0_i32_1 = arith.constant 0 : i32
    return %c0_i32, %c0_i32_0 : i32, i32
  }
  func.func @transform_3(%arg0: i32, %arg1: i32) -> (i32, i32) {
    %c0_i32 = arith.constant 0 : i32
    %c0_i32_0 = arith.constant 0 : i32
    %c0_i32_1 = arith.constant 0 : i32
    return %c0_i32, %c0_i32_0 : i32, i32
  }
  func.func @transform_4(%arg0: i32, %arg1: i32) -> (i32, i32) {
    %c0_i32 = arith.constant 0 : i32
    %c0_i32_0 = arith.constant 0 : i32
    %c0_i32_1 = arith.constant 0 : i32
    return %c0_i32, %c0_i32_0 : i32, i32
  }
  func.func @transform_5(%arg0: i32, %arg1: i32) -> (i32, i32, i32) {
    %c0_i32 = arith.constant 0 : i32
    %c0_i32_0 = arith.constant 0 : i32
    %c0_i32_1 = arith.constant 0 : i32
    %c0_i32_2 = arith.constant 0 : i32
    return %c0_i32, %c0_i32_0, %c0_i32_1 : i32, i32, i32
  }
  func.func @transform_6(%arg0: i32, %arg1: i32) -> (i32, i32) {
    %c0_i32 = arith.constant 0 : i32
    %c0_i32_0 = arith.constant 0 : i32
    %c0_i32_1 = arith.constant 0 : i32
    return %c0_i32, %c0_i32_0 : i32, i32
  }
  func.func @transform_7(%arg0: i32, %arg1: i32) -> (i32, i32, i32) {
    %c0_i32 = arith.constant 0 : i32
    %c0_i32_0 = arith.constant 0 : i32
    return %arg0, %arg1, %c0_i32 : i32, i32, i32
  }
}

</mosaic_0001>

<bundles_post_ra>
// kernel: generator_qscore_gru.1
= control target key start
LH: loop header
LB: loop body
LE: loop exit
PB: predicated region body
PF: predicated region fallthrough
CT: control target
= control target key end

     0   :  { %v3820_v3 = vmov 0.0   ;;  %vm67_vm0 = vcmask 195584   ;;  %vm2493_vm1 = vmmov 0   ;;  %vm1859_vm5 = vcmask 1041409   ;;  %s3811_s1 = inlined_call_operand.vmem [shape: f32[24,384], index: 1, kind: input, shape index: {}]   ;;  %s3812_s0 = inlined_call_operand.vmem [shape: f32[1,64,24], index: 0, kind: input, shape index: {}]   ;;  %s3813_s2 = inlined_call_operand.vmem [shape: f32[128,384], index: 2, kind: input, shape index: {}]   ;;  %s3814_s3 = inlined_call_operand.vmem [shape: f32[1,384], index: 3, kind: input, shape index: {}]   ;;  %s3815_s4 = inlined_call_operand.vmem [shape: f32[1,384], index: 4, kind: input, shape index: {}]   ;;  %s3816_s5 = inlined_call_operand.vmem [shape: f32[1,1,128], index: 5, kind: input, shape index: {}]   ;;  %s3817_s6 = inlined_call_operand.<no memory space> [shape: f32[1,1], index: 6, kind: input, shape index: {}]   ;;  %s3818_s7 = inlined_call_operand.vmem [shape: f32[1,8,8], index: 7, kind: output, shape index: {}]  }
   0x1   :  { %v48_v0 = vld [vmem:[%s3811_s1 + $0x38] sm:$0xff]  ;;  %v47_v1 = vld [vmem:[%s3811_s1 + $0x30] sm:$0xff]  ;;  %v45_v2 = vld [vmem:[%s3811_s1 + $0x20] sm:$0xff]  ;;  %156 = vmatprep.mubr.f32.mxu0 %v3820_v3  ;;  %vm1861_vm7 = vcmask 1042434   ;;  %vm1863_vm9 = vcmask 1043459   ;;  %vm1865_vm11 = vcmask 1044484  }
   0x2   :  { %118 = vmatprep.subr.mxu0 %v48_v0  ;;  %v44_v4 = vld [vmem:[%s3811_s1 + $0x18] sm:$0xff]  ;;  %v42_v5 = vld [vmem:[%s3811_s1 + $0x8] sm:$0xff]  ;;  %v33_v6 = vld [vmem:[%s3812_s0] sm:$0xff]  ;;  %vm1867_vm13 = vcmask 1045509   ;;  %vm1869_vm15 = vcmask 1046534  }
   0x3   :  { %119 = vmatpush1.msra.mxu0 %v47_v1  ;;  %v41_v7 = vld [vmem:[%s3811_s1] sm:$0xff]  ;;  %2067 = vmatprep.mubr.msk.f32.mxu1 %vm67_vm0, %v33_v6  ;;  %v2561_v8 = vld [vmem:[%s3813_s2 + $0x170] sm:$0xff]  ;;  %v2566_v9 = vld [vmem:[%s3813_s2 + $0x168] sm:$0xff] }
   0x4   :  { %120 = vmatprep.subr.mxu0 %v45_v2  ;;  %3857 = vst [vmem:[#allocation6_spill] sm:$0xff] %v2561_v8  ;;  %v2571_v10 = vld [vmem:[%s3813_s2 + $0x158] sm:$0xff]  ;;  %v2578_v11 = vld [vmem:[%s3813_s2 + $0x150] sm:$0xff]  ;;  %v2585_v12 = vld [vmem:[%s3812_s0 + $0x8] sm:$0xff]  ;;  %v3819_v2 = vlaneseq }
   0x5   :  { %121 = vmatpush1.msra.mxu0 %v44_v4  ;;  %v2590_v13 = vld [vmem:[%s3813_s2 + $0x140] sm:$0xff]  ;;  %v2596_v14 = vld [vmem:[%s3813_s2 + $0x138] sm:$0xff]  ;;  %v2602_v15 = vld [vmem:[%s3813_s2 + $0x128] sm:$0xff] }
   0x6   :  { %122 = vmatprep.subr.mxu0 %v42_v5  ;;  %v2610_v16 = vld [vmem:[%s3813_s2 + $0x120] sm:$0xff]  ;;  %v2617_v17 = vld [vmem:[%s3812_s0 + $0x10] sm:$0xff]  ;;  %v2628_v19 = vld [vmem:[%s3813_s2 + $0x108] sm:$0xff]  ;;  %v3009_v4 = vshrl.u32 %v3819_v2, 7 }
   0x7   :  { %123 = vmatpush1.msra.mxu0 %v41_v7  ;;  %v2622_v18 = vld [vmem:[%s3813_s2 + $0x110] sm:$0xff]  ;;  %v49_v20 = vld [vmem:[%s3811_s1 + $0x40] sm:$0xff]  ;;  %v2637_v21 = vld [vmem:[%s3813_s2 + $0xf8] sm:$0xff] }
   0x8   :  { %1880 = vmatmul.mubr.msk.f32.vlgmr.msra.gmra.mxu0 %vm67_vm0, %v33_v6  ;;  %403 = vmatprep.subr.mxu0 %v2561_v8  ;;  %v2645_v22 = vld [vmem:[%s3813_s2 + $0xf0] sm:$0xff]  ;;  %v46_v23 = vld [vmem:[%s3811_s1 + $0x28] sm:$0xff]  ;;  %v2655_v24 = vld [vmem:[%s3812_s0 + $0x18] sm:$0xff]  ;;  %3866 = vst [vmem:[#allocation15_spill] sm:$0xff] %v3009_v4  ;;  %v54_v5 = vsub.s32 0, %v3009_v4 }
   0x9   :  { %404 = vmatpush1.msra.mxu0 %v2566_v9  ;;  %162 = vmatprep.mubr.f32.mxu0 %v3820_v3  ;;  %v2660_v25 = vld [vmem:[%s3813_s2 + $0xe0] sm:$0xff]  ;;  %v2666_v26 = vld [vmem:[%s3813_s2 + $0xd8] sm:$0xff]  ;;  %v2672_v27 = vld [vmem:[%s3813_s2 + $0xc8] sm:$0xff] }
   0xa   :  { %405 = vmatprep.subr.mxu0 %v2571_v10  ;;  %2061 = vmatprep.subr.mxu1 %v49_v20  ;;  %v2680_v28 = vld [vmem:[%s3813_s2 + $0xc0] sm:$0xff]  ;;  %v43_v29 = vld [vmem:[%s3811_s1 + $0x10] sm:$0xff]  ;;  %v2701_v32 = vld [vmem:[%s3813_s2 + $0xa8] sm:$0xff] }
   0xb   :  { %406 = vmatpush1.msra.mxu0 %v2578_v11  ;;  %2062 = vmatpush3.msra.mxu1 %v49_v20  ;;  %v2690_v30 = vld [vmem:[%s3812_s0 + $0x20] sm:$0xff]  ;;  %v2695_v31 = vld [vmem:[%s3813_s2 + $0xb0] sm:$0xff]  ;;  %v2707_v33 = vld [vmem:[%s3813_s2 + $0x98] sm:$0xff] }
   0xc   :  { %1881 = vmatmul.mubr.msk.f32.gmra.mxu0 %vm67_vm0, %v2585_v12  ;;  %407 = vmatprep.subr.mxu0 %v2590_v13  ;;  %v2715_v34 = vld [vmem:[%s3813_s2 + $0x90] sm:$0xff]  ;;  %v2722_v35 = vld [vmem:[%s3812_s0 + $0x28] sm:$0xff]  ;;  %v2727_v36 = vld [vmem:[%s3813_s2 + $0x80] sm:$0xff] }
   0xd   :  { %408 = vmatpush1.msra.mxu0 %v2596_v14  ;;  %168 = vmatprep.mubr.f32.mxu0 %v3820_v3  ;;  %v2733_v37 = vld [vmem:[%s3813_s2 + $0x78] sm:$0xff]  ;;  %v2739_v38 = vld [vmem:[%s3813_s2 + $0x68] sm:$0xff]  ;;  %v2748_v39 = vld [vmem:[%s3813_s2 + $0x60] sm:$0xff] }
   0xe   :  { %409 = vmatprep.subr.mxu0 %v2602_v15  ;;  %2063 = vmatprep.subr.mxu1 %v46_v23  ;;  %v2753_v40 = vld [vmem:[%s3813_s2 + $0x178] sm:$0xff]  ;;  %v39_v41 = vld [vmem:[%s3812_s0 + $0x30] sm:$0xff]  ;;  %v2769_v43 = vld [vmem:[%s3813_s2 + $0x48] sm:$0xff] }
   0xf   :  { %410 = vmatpush1.msra.mxu0 %v2610_v16  ;;  %2064 = vmatpush3.msra.mxu1 %v46_v23  ;;  %v2763_v42 = vld [vmem:[%s3813_s2 + $0x50] sm:$0xff]  ;;  %v2777_v44 = vld [vmem:[%s3813_s2 + $0x38] sm:$0xff]  ;;  %v2790_v46 = vld [vmem:[%s3813_s2 + $0x160] sm:$0xff] }
  0x10   :  { %1882 = vmatmul.mubr.msk.f32.gmra.mxu0 %vm67_vm0, %v2617_v17  ;;  %411 = vmatprep.subr.mxu0 %v2622_v18  ;;  %v2785_v45 = vld [vmem:[%s3813_s2 + $0x30] sm:$0xff]  ;;  %v40_v47 = vld [vmem:[%s3812_s0 + $0x38] sm:$0xff]  ;;  %v2800_v48 = vld [vmem:[%s3813_s2 + $0x20] sm:$0xff] }
  0x11   :  { %412 = vmatpush1.msra.mxu0 %v2628_v19  ;;  %174 = vmatprep.mubr.f32.mxu0 %v3820_v3  ;;  %3858 = vst [vmem:[#allocation7_spill] sm:$0xff] %v2785_v45  ;;  %3859 = vst [vmem:[#allocation8_spill] sm:$0xff] %v2800_v48  ;;  %v2806_v49 = vld [vmem:[%s3813_s2 + $0x18] sm:$0xff]  ;;  %v2813_v50 = vld [vmem:[%s3813_s2 + $0x8] sm:$0xff] }
  0x12   :  { %413 = vmatprep.subr.mxu0 %v2637_v21  ;;  %2065 = vmatprep.subr.mxu1 %v43_v29  ;;  %3860 = vst [vmem:[#allocation9_spill] sm:$0xff] %v2806_v49  ;;  %3861 = vst [vmem:[#allocation10_spill] sm:$0xff] %v2813_v50  ;;  %v2821_v51 = vld [vmem:[%s3813_s2] sm:$0xff]  ;;  %v2826_v52 = vld [vmem:[%s3813_s2 + $0x148] sm:$0xff] }
  0x13   :  { %414 = vmatpush1.msra.mxu0 %v2645_v22  ;;  %2066 = vmatpush3.msra.mxu1 %v43_v29  ;;  %3862 = vst [vmem:[#allocation11_spill] sm:$0xff] %v2821_v51  ;;  %v2835_v53 = vld [vmem:[%s3813_s2 + $0x130] sm:$0xff]  ;;  %v2844_v54 = vld [vmem:[%s3813_s2 + $0x118] sm:$0xff]  ;;  %v2853_v55 = vld [vmem:[%s3813_s2 + $0x100] sm:$0xff] }
  0x14   :  { %1883 = vmatmul.mubr.msk.f32.gmra.mxu0 %vm67_vm0, %v2655_v24  ;;  %415 = vmatprep.subr.mxu0 %v2660_v25  ;;  %v2864_v56 = vld [vmem:[%s3813_s2 + $0xe8] sm:$0xff]  ;;  %v2873_v57 = vld [vmem:[%s3813_s2 + $0xd0] sm:$0xff]  ;;  %v2883_v58 = vld [vmem:[%s3813_s2 + $0xb8] sm:$0xff] }
  0x15   :  { %416 = vmatpush1.msra.mxu0 %v2666_v26  ;;  %180 = vmatprep.mubr.f32.mxu0 %v3820_v3  ;;  %v2892_v59 = vld [vmem:[%s3813_s2 + $0xa0] sm:$0xff]  ;;  %v2902_v60 = vld [vmem:[%s3813_s2 + $0x88] sm:$0xff]  ;;  %v2911_v61 = vld [vmem:[%s3813_s2 + $0x70] sm:$0xff] }
  0x16   :  { %417 = vmatprep.subr.mxu0 %v2672_v27  ;;  %2079 = vmatprep.subr.mxu1 %v3820_v3  ;;  %v2920_v62 = vld [vmem:[%s3813_s2 + $0x58] sm:$0xff]  ;;  %v2929_v63 = vld [vmem:[%s3813_s2 + $0x40] sm:$0xff]  ;;  %v2938_v0 = vld [vmem:[%s3813_s2 + $0x28] sm:$0xff] }
  0x17   :  { %418 = vmatpush1.msra.mxu0 %v2680_v28  ;;  %2068 = vmatmul.mubr.msk.f32.vlgmr.msra.gmra.mxu1 %vm67_vm0, %v2585_v12  ;;  %3863 = vst [vmem:[#allocation12_spill] sm:$0xff] %v2929_v63  ;;  %3864 = vst [vmem:[#allocation13_spill] sm:$0xff] %v2938_v0  ;;  %v2947_v1 = vld [vmem:[%s3813_s2 + $0x10] sm:$0xff]  ;;  %v50_v6 = vld [vmem:[%s3814_s3] sm:$0x7]  ;;  %v58_v12 = vsub.s32 1, %v3009_v4 }
  0x18   :  { %1884 = vmatmul.mubr.msk.f32.gmra.mxu0 %vm67_vm0, %v2690_v30  ;;  %419 = vmatprep.subr.mxu0 %v2695_v31  ;;  %3865 = vst [vmem:[#allocation14_spill] sm:$0xff] %v2947_v1  ;;  %v55_v20 = vrot.slane %v50_v6, %v54_v5 }
  0x19   :  { %420 = vmatpush1.msra.mxu0 %v2701_v32  ;;  %186 = vmatprep.mubr.f32.mxu0 %v3820_v3 }
  0x1a   :  { %421 = vmatprep.subr.mxu0 %v2707_v33  ;;  %2080 = vmatpush3.msra.mxu1 %v2753_v40 }
  0x1b   :  { %422 = vmatpush1.msra.mxu0 %v2715_v34  ;;  %2081 = vmatprep.subr.mxu1 %v3820_v3 }
  0x1c   :  { %1885 = vmatmul.mubr.msk.f32.gmra.mxu0 %vm67_vm0, %v2722_v35  ;;  %423 = vmatprep.subr.mxu0 %v2727_v36 }
  0x1d   :  { %424 = vmatpush1.msra.mxu0 %v2733_v37  ;;  %192 = vmatprep.mubr.f32.mxu0 %v3820_v3 }
  0x1e   :  { %425 = vmatprep.subr.mxu0 %v2739_v38  ;;  %2082 = vmatpush3.msra.mxu1 %v2790_v46 }
  0x1f   :  { %426 = vmatpush1.msra.mxu0 %v2748_v39  ;;  %2083 = vmatprep.subr.mxu1 %v3820_v3 }
  0x20   :  { %1886 = vmatmul.mubr.msk.f32.gmra.mxu0 %vm67_vm0, %v39_v41  ;;  %427 = vmatprep.subr.mxu0 %v2763_v42 }
  0x21   :  { %428 = vmatpush1.msra.mxu0 %v2769_v43  ;;  %198 = vmatprep.mubr.f32.mxu0 %v3820_v3 }
  0x22   :  { %429 = vmatprep.subr.mxu0 %v2777_v44  ;;  %2084 = vmatpush3.msra.mxu1 %v2826_v52 }
  0x23   :  { %430 = vmatpush1.msra.mxu0 %v2785_v45  ;;  %2085 = vmatprep.subr.mxu1 %v3820_v3 }
  0x24   :  { %1887 = vmatmul.mubr.msk.f32.gmra.mxu0 %vm67_vm0, %v40_v47  ;;  %431 = vmatprep.subr.mxu0 %v2800_v48 }
  0x25   :  { %432 = vmatpush1.msra.mxu0 %v2806_v49  ;;  %467 = vmatprep.mubr.f32.mxu0 %v3820_v3 }
  0x26   :  { %433 = vmatprep.subr.mxu0 %v2813_v50  ;;  %2086 = vmatpush3.msra.mxu1 %v2835_v53 }
  0x27   :  { %434 = vmatpush1.msra.mxu0 %v2821_v51  ;;  %2070 = vmatprep.mubr.msk.f32.mxu1 %vm67_vm0, %v2617_v17 }
  0x28   :  { %468 = vmatmul.mubr.f32.vlgmr.msra.gmra.mxu0 %v3820_v3  ;;  %2087 = vmatprep.subr.mxu1 %v3820_v3 }
  0x29   :  { %2071 = vmatmul.mubr.msk.f32.gmra.mxu1 %vm67_vm0, %v2655_v24  ;;  %569 = vmatprep.subr.mxu0 %v2561_v8  ;;  %v59_v24 = vrot.slane %v50_v6, %v58_v12 }
  0x2a   :  { %2088 = vmatpush3.msra.mxu1 %v2844_v54  ;;  %2073 = vmatprep.mubr.msk.f32.mxu1 %vm67_vm0, %v2690_v30 }
  0x2b   :  { %2089 = vmatprep.subr.mxu1 %v3820_v3  ;;  %570 = vmatpush1.msra.mxu0 %v2566_v9 }
  0x2c   :  { %2090 = vmatpush3.msra.mxu1 %v2853_v55  ;;  %571 = vmatprep.subr.mxu0 %v2571_v10 }
  0x2d   :  { %2091 = vmatprep.subr.mxu1 %v3820_v3  ;;  %2074 = vmatmul.mubr.msk.f32.gmra.mxu1 %vm67_vm0, %v2722_v35 }
  0x2e   :  { %2092 = vmatpush3.msra.mxu1 %v2864_v56  ;;  %2076 = vmatprep.mubr.msk.f32.mxu1 %vm67_vm0, %v39_v41 }
  0x2f   :  { %2093 = vmatprep.subr.mxu1 %v3820_v3  ;;  %572 = vmatpush1.msra.mxu0 %v2578_v11 }
  0x30   :  { %2094 = vmatpush3.msra.mxu1 %v2873_v57  ;;  %573 = vmatprep.subr.mxu0 %v2590_v13 }
  0x31   :  { %2095 = vmatprep.subr.mxu1 %v3820_v3  ;;  %2077 = vmatmul.mubr.msk.f32.gmra.mxu1 %vm67_vm0, %v40_v47  ;;  %vm1871_vm0 = vcmask 1047559  }
  0x32   :  { %2096 = vmatpush3.msra.mxu1 %v2883_v58  ;;  %2111 = vmatprep.mubr.msk.f32.mxu1 %vm2493_vm1, %v3820_v3 }
  0x33   :  { %2097 = vmatprep.subr.mxu1 %v3820_v3  ;;  %574 = vmatpush1.msra.mxu0 %v2596_v14 }
  0x34   :  { %2098 = vmatpush3.msra.mxu1 %v2892_v59  ;;  %575 = vmatprep.subr.mxu0 %v2602_v15 }
  0x35   :  { %2099 = vmatprep.subr.mxu1 %v3820_v3  ;;  %576 = vmatpush1.msra.mxu0 %v2610_v16 }
  0x36   :  { %2100 = vmatpush3.msra.mxu1 %v2902_v60  ;;  %577 = vmatprep.subr.mxu0 %v2622_v18 }
  0x37   :  { %2101 = vmatprep.subr.mxu1 %v3820_v3  ;;  %578 = vmatpush1.msra.mxu0 %v2628_v19 }
  0x38   :  { %2102 = vmatpush3.msra.mxu1 %v2911_v61  ;;  %579 = vmatprep.subr.mxu0 %v2637_v21 }
  0x39   :  { %2103 = vmatprep.subr.mxu1 %v3820_v3  ;;  %580 = vmatpush1.msra.mxu0 %v2645_v22 }
  0x3a   :  { %2104 = vmatpush3.msra.mxu1 %v2920_v62  ;;  %581 = vmatprep.subr.mxu0 %v2660_v25 }
  0x3b   :  { %2105 = vmatprep.subr.mxu1 %v3820_v3  ;;  %582 = vmatpush1.msra.mxu0 %v2666_v26 }
  0x3c   :  { %2106 = vmatpush3.msra.mxu1 %v2929_v63  ;;  %583 = vmatprep.subr.mxu0 %v2672_v27 }
  0x3d   :  { %2107 = vmatprep.subr.mxu1 %v3820_v3  ;;  %584 = vmatpush1.msra.mxu0 %v2680_v28 }
  0x3e   :  { %2108 = vmatpush3.msra.mxu1 %v2938_v0  ;;  %585 = vmatprep.subr.mxu0 %v2695_v31 }
  0x3f   :  { %2109 = vmatprep.subr.mxu1 %v3820_v3  ;;  %586 = vmatpush1.msra.mxu0 %v2701_v32 }
  0x40   :  { %2110 = vmatpush3.msra.mxu1 %v2947_v1  ;;  %587 = vmatprep.subr.mxu0 %v2707_v33 }
  0x41   :  { %2112 = vmatmul.mubr.f32.vlgmr.msra.gmra.mxu1 %v3820_v3  ;;  %2114 = vmatprep.subr.mxu1 %v3820_v3 }
  0x42   :  { %2115 = vmatpush3.msra.mxu1 %v2753_v40  ;;  %588 = vmatpush1.msra.mxu0 %v2715_v34 }
  0x43   :  { %2116 = vmatprep.subr.mxu1 %v3820_v3  ;;  %589 = vmatprep.subr.mxu0 %v2727_v36 }
  0x44   :  { %2117 = vmatpush3.msra.mxu1 %v2790_v46  ;;  %590 = vmatpush1.msra.mxu0 %v2733_v37 }
  0x45   :  { %2118 = vmatprep.subr.mxu1 %v3820_v3  ;;  %591 = vmatprep.subr.mxu0 %v2739_v38 }
  0x46   :  { %2119 = vmatpush3.msra.mxu1 %v2826_v52  ;;  %592 = vmatpush1.msra.mxu0 %v2748_v39 }
  0x47   :  { %2120 = vmatprep.subr.mxu1 %v3820_v3  ;;  %593 = vmatprep.subr.mxu0 %v2763_v42 }
  0x48   :  { %2121 = vmatpush3.msra.mxu1 %v2835_v53  ;;  %594 = vmatpush1.msra.mxu0 %v2769_v43 }
  0x49   :  { %2122 = vmatprep.subr.mxu1 %v3820_v3  ;;  %595 = vmatprep.subr.mxu0 %v2777_v44 }
  0x4a   :  { %2123 = vmatpush3.msra.mxu1 %v2844_v54  ;;  %596 = vmatpush1.msra.mxu0 %v2785_v45 }
  0x4b   :  { %2124 = vmatprep.subr.mxu1 %v3820_v3  ;;  %597 = vmatprep.subr.mxu0 %v2800_v48 }
  0x4c   :  { %2125 = vmatpush3.msra.mxu1 %v2853_v55  ;;  %598 = vmatpush1.msra.mxu0 %v2806_v49 }
  0x4d   :  { %2126 = vmatprep.subr.mxu1 %v3820_v3  ;;  %599 = vmatprep.subr.mxu0 %v2813_v50 }
  0x4e   :  { %2127 = vmatpush3.msra.mxu1 %v2864_v56  ;;  %600 = vmatpush1.msra.mxu0 %v2821_v51 }
  0x4f   :  { %2128 = vmatprep.subr.mxu1 %v3820_v3  ;;  %633 = vmatprep.mubr.f32.mxu0 %v3820_v3 }
  0x50   :  { %2129 = vmatpush3.msra.mxu1 %v2873_v57  ;;  %2146 = vmatprep.mubr.msk.f32.mxu1 %vm2493_vm1, %v3820_v3 }
  0x51   :  { %2130 = vmatprep.subr.mxu1 %v3820_v3  ;;  %736 = vmatprep.subr.mxu0 %v2561_v8 }
  0x52   :  { %2131 = vmatpush3.msra.mxu1 %v2883_v58 }
  0x53   :  { %2132 = vmatprep.subr.mxu1 %v3820_v3 }
  0x54   :  { %2133 = vmatpush3.msra.mxu1 %v2892_v59 }
  0x55   :  { %2134 = vmatprep.subr.mxu1 %v3820_v3 }
  0x56   :  { %2135 = vmatpush3.msra.mxu1 %v2902_v60 }
  0x57   :  { %2136 = vmatprep.subr.mxu1 %v3820_v3 }
  0x58   :  { %2137 = vmatpush3.msra.mxu1 %v2911_v61 }
  0x59   :  { %2138 = vmatprep.subr.mxu1 %v3820_v3 }
  0x5a   :  { %2139 = vmatpush3.msra.mxu1 %v2920_v62 }
  0x5b   :  { %2140 = vmatprep.subr.mxu1 %v3820_v3 }
  0x5c   :  { %2141 = vmatpush3.msra.mxu1 %v2929_v63 }
  0x5d   :  { %2142 = vmatprep.subr.mxu1 %v3820_v3 }
  0x5e   :  { %2143 = vmatpush3.msra.mxu1 %v2938_v0  ;;  %v62_v0 = vsub.s32 2, %v3009_v4 }
  0x5f   :  { %2144 = vmatprep.subr.mxu1 %v3820_v3 }
  0x60   :  { %2145 = vmatpush3.msra.mxu1 %v2947_v1 }
  0x61   :  { %2149 = vmatprep.subr.mxu1 %v3820_v3 }
  0xc8   :  { %v158_v7 = vpop.f32.mrf.mxu0 }
  0xca   :  { %v160_v17 = vpop.f32.mrf.mxu0 }
  0xcc   :  { %v164_v23 = vpop.f32.mrf.mxu0 }
  0xcd   :  { %v3016_v29 = vadd.f32 %v164_v23, %v55_v20 }
  0xce   :  { %v166_v30 = vpop.f32.mrf.mxu0 }
  0xcf   :  { %3867 = vst [vmem:[#allocation16_spill] sm:$0xff] %v3016_v29  ;;  %v3018_v35 = vadd.f32 %v166_v30, %v59_v24 }
  0xd0   :  { %v170_v41 = vpop.f32.mrf.mxu0 }
  0xd1   :  { %3868 = vst [vmem:[#allocation17_spill] sm:$0xff] %v3018_v35  ;;  %v3020_v47 = vadd.f32 %v170_v41, %v55_v20  ;;  %v63_v35 = vrot.slane %v50_v6, %v62_v0 }
  0xd2   :  { %v172_v2 = vpop.f32.mrf.mxu0 }
  0xd3   :  { %3869 = vst [vmem:[#allocation18_spill] sm:$0xff] %v3020_v47  ;;  %v3022_v3 = vadd.f32 %v172_v2, %v59_v24 }
  0xd4   :  { %v176_v8 = vpop.f32.mrf.mxu0 }
  0xd5   :  { %3870 = vst [vmem:[#allocation19_spill] sm:$0xff] %v3022_v3  ;;  %v3024_v1 = vadd.f32 %v176_v8, %v55_v20 }
  0xd6   :  { %v178_v51 = vpop.f32.mrf.mxu0 }
  0xd7   :  { %3871 = vst [vmem:[#allocation20_spill] sm:$0xff] %v3024_v1  ;;  %v3026_v50 = vadd.f32 %v178_v51, %v59_v24  ;;  %v2069_v3 = vpop.f32.mrf.mxu1 }
  0xd8   :  { %v182_v49 = vpop.f32.mrf.mxu0  ;;  %v3037_v8 = vadd.f32 %v2069_v3, %v63_v35 }
  0xd9   :  { %3872 = vst [vmem:[#allocation21_spill] sm:$0xff] %v3026_v50  ;;  %v3029_v23 = vadd.f32 %v182_v49, %v55_v20  ;;  %v382_v49 = vld [vmem:[%s3815_s4] sm:$0x7] }
  0xda   :  { %v184_v29 = vpop.f32.mrf.mxu0  ;;  %3877 = vst [vmem:[#allocation26_spill] sm:$0xff] %v3037_v8 }
  0xdb   :  { %3873 = vst [vmem:[#allocation22_spill] sm:$0xff] %v3029_v23  ;;  %v3031_v30 = vadd.f32 %v184_v29, %v59_v24  ;;  %v159_v23 = vadd.f32 %v158_v7, %v55_v20 }
  0xdc   :  { %v188_v41 = vpop.f32.mrf.mxu0 }
  0xdd   :  { %3874 = vst [vmem:[#allocation23_spill] sm:$0xff] %v3031_v30  ;;  %v3033_v47 = vadd.f32 %v188_v41, %v55_v20  ;;  %v3048_v41 = vrot.slane %v382_v49, %v54_v5 }
  0xde   :  { %v190_v2 = vpop.f32.mrf.mxu0 }
  0xdf   :  { %3875 = vst [vmem:[#allocation24_spill] sm:$0xff] %v3033_v47  ;;  %v3035_v48 = vadd.f32 %v190_v2, %v59_v24  ;;  %3881 = vst [vmem:[#allocation30_spill] sm:$0xff] %v3048_v41 }
  0xe0   :  { %v194_v51 = vpop.f32.mrf.mxu0 }
  0xe1   :  { %3876 = vst [vmem:[#allocation25_spill] sm:$0xff] %v3035_v48  ;;  %v3039_v50 = vadd.f32 %v194_v51, %v55_v20  ;;  %v271_v48 = vpop.f32.mrf.mxu1 }
  0xe2   :  { %v196_v4 = vpop.f32.mrf.mxu0 }
  0xe3   :  { %3878 = vst [vmem:[#allocation27_spill] sm:$0xff] %v3039_v50  ;;  %v3044_v29 = vadd.f32 %v196_v4, %v59_v24  ;;  %v3053_v50 = vrot.slane %v382_v49, %v58_v12 }
  0xe4   :  { %v200_v6 = vpop.f32.mrf.mxu0 }
  0xe5   :  { %3879 = vst [vmem:[#allocation28_spill] sm:$0xff] %v3044_v29  ;;  %v3046_v30 = vadd.f32 %v200_v6, %v55_v20 }
  0xe6   :  { %v202_v47 = vpop.f32.mrf.mxu0 }
  0xe7   :  { %3880 = vst [vmem:[#allocation29_spill] sm:$0xff] %v3046_v30  ;;  %v3050_v2 = vadd.f32 %v202_v47, %v59_v24 }
  0xe8   :  { %v469_v3 = vpop.f32.mrf.mxu0 }
  0xe9   :  { %3882 = vst [vmem:[#allocation31_spill] sm:$0xff] %v3050_v2  ;;  %v470_v51 = vadd.f32 %v469_v3, %v3048_v41  ;;  %v2072_v8 = vpop.f32.mrf.mxu1  ;;  %v161_v2 = vadd.f32 %v160_v17, %v59_v24  ;;  %v3068_v24 = vrot.slane %v382_v49, %v62_v0  ;;  %v3074_v0 = vld [vmem:[%s3816_s5] ss:$0 sm:$0xff] }
  0xea   :  { %v471_v1 = vpop.f32.mrf.mxu0  ;;  %v3055_v4 = vadd.f32 %v2072_v8, %v63_v35 }
  0xeb   :  { %v544_v63 = vadd.f32 %v470_v51, %v159_v23  ;;  %v281_v29 = vpop.f32.mrf.mxu1  ;;  %v472_v5 = vadd.f32 %v471_v1, %v3053_v50 }
  0xec   :  { %3883 = vst [vmem:[#allocation32_spill] sm:$0xff] %v3055_v4  ;;  %v3058_v30 = vadd.f32 %v281_v29, %v63_v35 }
  0xed   :  { %v1896_v6 = vmul.f32 -1.442695, %v544_v63  ;;  %v2075_v47 = vpop.f32.mrf.mxu1  ;;  %v551_v20 = vadd.f32 %v472_v5, %v161_v2 }
  0xee   :  { %3884 = vst [vmem:[#allocation33_spill] sm:$0xff] %v3058_v30  ;;  %v3060_v45 = vadd.f32 %v2075_v47, %v63_v35  ;;  %v3901_v30 = vld [vmem:[#allocation17_spill] sm:$0xff] }
  0xef   :  { %2363 = vpow2.f32 %v1896_v6  ;;  %v291_v7 = vpop.f32.mrf.mxu1  ;;  %v1897_v8 = vmul.f32 -1.442695, %v551_v20 }
  0xf0   :  { %3885 = vst [vmem:[#allocation34_spill] sm:$0xff] %v3060_v45  ;;  %v3062_v12 = vadd.f32 %v291_v7, %v63_v35  ;;  %v272_v7 = vadd.f32 %v271_v48, %v63_v35 }
  0xf1   :  { %v2078_v3 = vpop.f32.mrf.mxu1  ;;  %2365 = vpow2.f32 %v1897_v8 }
  0xf2   :  { %3886 = vst [vmem:[#allocation35_spill] sm:$0xff] %v3062_v12  ;;  %v3064_v41 = vadd.f32 %v2078_v3, %v63_v35 }
  0xf3   :  { %v301_v23 = vpop.f32.mrf.mxu1 }
  0xf4   :  { %3887 = vst [vmem:[#allocation36_spill] sm:$0xff] %v3064_v41  ;;  %v3066_v51 = vadd.f32 %v301_v23, %v63_v35  ;;  %v3889_v35 = vmov 0.0  }
  0xf6   :  { %3888 = vst [vmem:[#allocation37_spill] sm:$0xff] %v3066_v51 }
  0xfc   :  { %v2364_v63 = vpop.eup %2363 }
  0xfd   :  { %v548_v1 = vadd.f32 1.0, %v2364_v63 }
  0xfe   :  { %v2366_v6 = vpop.eup %2365 }
  0xff   :  { %2367 = vrcp.f32 %v548_v1  ;;  %v555_v47 = vadd.f32 1.0, %v2366_v6  ;;  %v3892_v1 = vld [vmem:[#allocation8_spill] sm:$0xff]  ;;  %v3895_v6 = vld [vmem:[#allocation10_spill] sm:$0xff] }
 0x101   :  { %v540_v29 = vpop.f32.mrf.mxu1  ;;  %2369 = vrcp.f32 %v555_v47  ;;  %v3896_v47 = vld [vmem:[#allocation11_spill] sm:$0xff] }
 0x102   :  { %v541_v2 = vadd.f32 %v540_v29, %v3068_v24  ;;  %v3893_v29 = vld [vmem:[#allocation9_spill] sm:$0xff] }
 0x103   :  { %v2113_v17 = vpop.f32.mrf.mxu1 }
 0x104   :  { %v3894_v17 = vld [vmem:[#allocation13_spill] sm:$0xff] }
 0x10c   :  { %v2368_v5 = vpop.eup %2367 }
 0x10d   :  { %v558_v3 = vmul.f32 %v2368_v5, %v541_v2  ;;  %v3897_v2 = vld [vmem:[#allocation14_spill] sm:$0xff] }
 0x10e   :  { %v2370_v20 = vpop.eup %2369  ;;  %v3898_v5 = vld [vmem:[#allocation6_spill] sm:$0xff] }
 0x10f   :  { %v559_v41 = vadd.f32 %v558_v3, %v272_v7  ;;  %v561_v23 = vsub.f32 1.0, %v2370_v20  ;;  %v563_v63 = vmul.f32 0.0, %v2370_v20  ;;  %v3899_v20 = vld [vmem:[#allocation30_spill] sm:$0xff] }
 0x111   :  { %2371 = vtanh.f32 %v559_v41  ;;  %v3890_v41 = vld [vmem:[#allocation7_spill] sm:$0xff] }
 0x11e   :  { %v2372_v8 = vpop.eup %2371 }
 0x11f   :  { %v562_v51 = vmul.f32 %v2372_v8, %v561_v23 }
 0x121   :  { %v3076_v49 = vadd.f32 %v563_v63, %v562_v51  ;;  %v3891_v51 = vld [vmem:[#allocation12_spill] sm:$0xff] }
 0x123   :  { %634 = vmatmul.mubr.f32.vlgmr.msra.gmra.mxu0 %v3076_v49  ;;  %2147 = vmatmul.mubr.f32.vlgmr.msra.gmra.mxu1 %v3076_v49  ;;  %v1751_v48 = vmul.f32 %v3074_v0, %v3076_v49 }
 0x124   :  { %737 = vmatpush1.msra.mxu0 %v2566_v9  ;;  %2150 = vmatpush3.msra.mxu1 %v2753_v40 }
 0x125   :  { %1759 = vadd.xlane.f32.xlu0 %v1751_v48  ;;  %738 = vmatprep.subr.mxu0 %v2571_v10  ;;  %v3900_v48 = vld [vmem:[#allocation16_spill] sm:$0xff] }
 0x126   :  { %2151 = vmatprep.subr.mxu1 %v3889_v35  ;;  %739 = vmatpush1.msra.mxu0 %v2578_v11 }
 0x127   :  { %2152 = vmatpush3.msra.mxu1 %v2790_v46  ;;  %740 = vmatprep.subr.mxu0 %v2590_v13 }
 0x128   :  { %2153 = vmatprep.subr.mxu1 %v3889_v35  ;;  %741 = vmatpush1.msra.mxu0 %v2596_v14 }
 0x129   :  { %2154 = vmatpush3.msra.mxu1 %v2826_v52  ;;  %742 = vmatprep.subr.mxu0 %v2602_v15 }
 0x12a   :  { %2155 = vmatprep.subr.mxu1 %v3889_v35  ;;  %743 = vmatpush1.msra.mxu0 %v2610_v16 }
 0x12b   :  { %2156 = vmatpush3.msra.mxu1 %v2835_v53  ;;  %744 = vmatprep.subr.mxu0 %v2622_v18 }
 0x12c   :  { %2157 = vmatprep.subr.mxu1 %v3889_v35  ;;  %745 = vmatpush1.msra.mxu0 %v2628_v19 }
 0x12d   :  { %2158 = vmatpush3.msra.mxu1 %v2844_v54  ;;  %746 = vmatprep.subr.mxu0 %v2637_v21 }
 0x12e   :  { %2159 = vmatprep.subr.mxu1 %v3889_v35  ;;  %747 = vmatpush1.msra.mxu0 %v2645_v22 }
 0x12f   :  { %2160 = vmatpush3.msra.mxu1 %v2853_v55  ;;  %748 = vmatprep.subr.mxu0 %v2660_v25 }
 0x130   :  { %2161 = vmatprep.subr.mxu1 %v3889_v35  ;;  %749 = vmatpush1.msra.mxu0 %v2666_v26 }
 0x131   :  { %2162 = vmatpush3.msra.mxu1 %v2864_v56  ;;  %750 = vmatprep.subr.mxu0 %v2672_v27 }
 0x132   :  { %2163 = vmatprep.subr.mxu1 %v3889_v35  ;;  %751 = vmatpush1.msra.mxu0 %v2680_v28 }
 0x133   :  { %2164 = vmatpush3.msra.mxu1 %v2873_v57  ;;  %752 = vmatprep.subr.mxu0 %v2695_v31 }
 0x134   :  { %2165 = vmatprep.subr.mxu1 %v3889_v35  ;;  %753 = vmatpush1.msra.mxu0 %v2701_v32 }
 0x135   :  { %2166 = vmatpush3.msra.mxu1 %v2883_v58  ;;  %754 = vmatprep.subr.mxu0 %v2707_v33 }
 0x136   :  { %2167 = vmatprep.subr.mxu1 %v3889_v35  ;;  %755 = vmatpush1.msra.mxu0 %v2715_v34 }
 0x137   :  { %2168 = vmatpush3.msra.mxu1 %v2892_v59  ;;  %756 = vmatprep.subr.mxu0 %v2727_v36 }
 0x138   :  { %2169 = vmatprep.subr.mxu1 %v3889_v35  ;;  %757 = vmatpush1.msra.mxu0 %v2733_v37 }
 0x139   :  { %2170 = vmatpush3.msra.mxu1 %v2902_v60  ;;  %758 = vmatprep.subr.mxu0 %v2739_v38 }
 0x13a   :  { %2171 = vmatprep.subr.mxu1 %v3889_v35  ;;  %759 = vmatpush1.msra.mxu0 %v2748_v39 }
 0x13b   :  { %2172 = vmatpush3.msra.mxu1 %v2911_v61  ;;  %760 = vmatprep.subr.mxu0 %v2763_v42 }
 0x13c   :  { %2173 = vmatprep.subr.mxu1 %v3889_v35  ;;  %761 = vmatpush1.msra.mxu0 %v2769_v43 }
 0x13d   :  { %2174 = vmatpush3.msra.mxu1 %v2920_v62  ;;  %762 = vmatprep.subr.mxu0 %v2777_v44 }
 0x13e   :  { %2175 = vmatprep.subr.mxu1 %v3889_v35  ;;  %763 = vmatpush1.msra.mxu0 %v3890_v41 }
 0x13f   :  { %2176 = vmatpush3.msra.mxu1 %v3891_v51  ;;  %764 = vmatprep.subr.mxu0 %v3892_v1 }
 0x140   :  { %2177 = vmatprep.subr.mxu1 %v3889_v35  ;;  %765 = vmatpush1.msra.mxu0 %v3893_v29 }
 0x141   :  { %2178 = vmatpush3.msra.mxu1 %v3894_v17  ;;  %766 = vmatprep.subr.mxu0 %v3895_v6 }
 0x142   :  { %2179 = vmatprep.subr.mxu1 %v3889_v35  ;;  %767 = vmatpush1.msra.mxu0 %v3896_v47 }
 0x143   :  { %800 = vmatprep.mubr.f32.mxu0 %v3889_v35  ;;  %2180 = vmatpush3.msra.mxu1 %v3897_v2 }
 0x144   :  { %2181 = vmatprep.mubr.msk.f32.mxu1 %vm2493_vm1, %v3889_v35  ;;  %903 = vmatprep.subr.mxu0 %v3898_v5 }
 0x145   :  { %2184 = vmatprep.subr.mxu1 %v3889_v35 }
 0x1e3   :  { %v635_v7 = vpop.f32.mrf.mxu0  ;;  %v706_v3 = vpop.f32.mrf.mxu1 }
 0x1e4   :  { %v636_v23 = vadd.f32 %v635_v7, %v3899_v20  ;;  %v707_v1 = vadd.f32 %v706_v3, %v3068_v24  ;;  %v3912_v3 = vld [vmem:[#allocation19_spill] sm:$0xff] }
 0x1e5   :  { %v637_v8 = vpop.f32.mrf.mxu0  ;;  %v2148_v63 = vpop.f32.mrf.mxu1 }
 0x1e6   :  { %v710_v45 = vadd.f32 %v636_v23, %v3900_v48  ;;  %v638_v4 = vadd.f32 %v637_v8, %v3053_v50  ;;  %v3902_v63 = vld [vmem:[#allocation26_spill] sm:$0xff] }
 0x1e8   :  { %v1898_v12 = vmul.f32 -1.442695, %v710_v45  ;;  %v717_v2 = vadd.f32 %v638_v4, %v3901_v30 }
 0x1ea   :  { %2373 = vpow2.f32 %v1898_v12  ;;  %v1899_v47 = vmul.f32 -1.442695, %v717_v2 }
 0x1ec   :  { %2375 = vpow2.f32 %v1899_v47 }
 0x1f7   :  { %v2374_v6 = vpop.eup %2373 }
 0x1f8   :  { %v714_v5 = vadd.f32 1.0, %v2374_v6  ;;  %v3911_v6 = vld [vmem:[#allocation18_spill] sm:$0xff] }
 0x1f9   :  { %v2376_v17 = vpop.eup %2375 }
 0x1fa   :  { %2377 = vrcp.f32 %v714_v5  ;;  %v721_v29 = vadd.f32 1.0, %v2376_v17 }
 0x1fc   :  { %2379 = vrcp.f32 %v721_v29 }
 0x207   :  { %v2378_v7 = vpop.eup %2377 }
 0x208   :  { %v724_v20 = vmul.f32 %v2378_v7, %v707_v1 }
 0x209   :  { %v2380_v45 = vpop.eup %2379 }
 0x20a   :  { %v725_v23 = vadd.f32 %v724_v20, %v3902_v63  ;;  %v727_v8 = vsub.f32 1.0, %v2380_v45  ;;  %v729_v30 = vmul.f32 %v2380_v45, %v3076_v49 }
 0x20c   :  { %2381 = vtanh.f32 %v725_v23 }
 0x219   :  { %v2382_v12 = vpop.eup %2381 }
 0x21a   :  { %v728_v48 = vmul.f32 %v2382_v12, %v727_v8 }
 0x21c   :  { %v3156_v4 = vadd.f32 %v729_v30, %v728_v48 }
 0x21e   :  { %801 = vmatmul.mubr.f32.vlgmr.msra.gmra.mxu0 %v3156_v4  ;;  %2182 = vmatmul.mubr.f32.vlgmr.msra.gmra.mxu1 %v3156_v4  ;;  %v1752_v17 = vmul.f32 %v3074_v0, %v3156_v4 }
 0x21f   :  { %904 = vmatpush1.msra.mxu0 %v2566_v9  ;;  %2185 = vmatpush3.msra.mxu1 %v2753_v40  ;;  %v3903_v9 = vld [vmem:[#allocation8_spill] sm:$0xff] }
 0x220   :  { %1761 = vadd.xlane.f32.xlu0 %v1752_v17  ;;  %905 = vmatprep.subr.mxu0 %v2571_v10  ;;  %v3904_v10 = vld [vmem:[#allocation9_spill] sm:$0xff] }
 0x221   :  { %2186 = vmatprep.subr.mxu1 %v3889_v35  ;;  %906 = vmatpush1.msra.mxu0 %v2578_v11  ;;  %v3905_v11 = vld [vmem:[#allocation13_spill] sm:$0xff] }
 0x222   :  { %2187 = vmatpush3.msra.mxu1 %v2790_v46  ;;  %907 = vmatprep.subr.mxu0 %v2590_v13  ;;  %v3906_v13 = vld [vmem:[#allocation10_spill] sm:$0xff]  ;;  %v3913_v17 = vld [vmem:[#allocation33_spill] sm:$0xff] }
 0x223   :  { %2188 = vmatprep.subr.mxu1 %v3889_v35  ;;  %908 = vmatpush1.msra.mxu0 %v2596_v14  ;;  %v3907_v14 = vld [vmem:[#allocation11_spill] sm:$0xff] }
 0x224   :  { %2189 = vmatpush3.msra.mxu1 %v2826_v52  ;;  %909 = vmatprep.subr.mxu0 %v2602_v15  ;;  %v3908_v15 = vld [vmem:[#allocation14_spill] sm:$0xff] }
 0x225   :  { %2190 = vmatprep.subr.mxu1 %v3889_v35  ;;  %910 = vmatpush1.msra.mxu0 %v2610_v16  ;;  %v3909_v16 = vld [vmem:[#allocation6_spill] sm:$0xff] }
 0x226   :  { %2191 = vmatpush3.msra.mxu1 %v2835_v53  ;;  %911 = vmatprep.subr.mxu0 %v2622_v18 }
 0x227   :  { %2192 = vmatprep.subr.mxu1 %v3889_v35  ;;  %912 = vmatpush1.msra.mxu0 %v2628_v19 }
 0x228   :  { %2193 = vmatpush3.msra.mxu1 %v2844_v54  ;;  %913 = vmatprep.subr.mxu0 %v2637_v21  ;;  %v3910_v21 = vld [vmem:[#allocation30_spill] sm:$0xff] }
 0x229   :  { %2194 = vmatprep.subr.mxu1 %v3889_v35  ;;  %914 = vmatpush1.msra.mxu0 %v2645_v22 }
 0x22a   :  { %2195 = vmatpush3.msra.mxu1 %v2853_v55  ;;  %915 = vmatprep.subr.mxu0 %v2660_v25 }
 0x22b   :  { %2196 = vmatprep.subr.mxu1 %v3889_v35  ;;  %916 = vmatpush1.msra.mxu0 %v2666_v26 }
 0x22c   :  { %2197 = vmatpush3.msra.mxu1 %v2864_v56  ;;  %917 = vmatprep.subr.mxu0 %v2672_v27 }
 0x22d   :  { %2198 = vmatprep.subr.mxu1 %v3889_v35  ;;  %918 = vmatpush1.msra.mxu0 %v2680_v28 }
 0x22e   :  { %2199 = vmatpush3.msra.mxu1 %v2873_v57  ;;  %919 = vmatprep.subr.mxu0 %v2695_v31 }
 0x22f   :  { %2200 = vmatprep.subr.mxu1 %v3889_v35  ;;  %920 = vmatpush1.msra.mxu0 %v2701_v32 }
 0x230   :  { %2201 = vmatpush3.msra.mxu1 %v2883_v58  ;;  %921 = vmatprep.subr.mxu0 %v2707_v33 }
 0x231   :  { %2202 = vmatprep.subr.mxu1 %v3889_v35  ;;  %922 = vmatpush1.msra.mxu0 %v2715_v34 }
 0x232   :  { %2203 = vmatpush3.msra.mxu1 %v2892_v59  ;;  %923 = vmatprep.subr.mxu0 %v2727_v36 }
 0x233   :  { %2204 = vmatprep.subr.mxu1 %v3889_v35  ;;  %924 = vmatpush1.msra.mxu0 %v2733_v37 }
 0x234   :  { %2205 = vmatpush3.msra.mxu1 %v2902_v60  ;;  %925 = vmatprep.subr.mxu0 %v2739_v38 }
 0x235   :  { %2206 = vmatprep.subr.mxu1 %v3889_v35  ;;  %926 = vmatpush1.msra.mxu0 %v2748_v39 }
 0x236   :  { %2207 = vmatpush3.msra.mxu1 %v2911_v61  ;;  %927 = vmatprep.subr.mxu0 %v2763_v42 }
 0x237   :  { %2208 = vmatprep.subr.mxu1 %v3889_v35  ;;  %928 = vmatpush1.msra.mxu0 %v2769_v43 }
 0x238   :  { %2209 = vmatpush3.msra.mxu1 %v2920_v62  ;;  %929 = vmatprep.subr.mxu0 %v2777_v44 }
 0x239   :  { %2210 = vmatprep.subr.mxu1 %v3889_v35  ;;  %930 = vmatpush1.msra.mxu0 %v3890_v41 }
 0x23a   :  { %2211 = vmatpush3.msra.mxu1 %v3891_v51  ;;  %931 = vmatprep.subr.mxu0 %v3903_v9 }
 0x23b   :  { %2212 = vmatprep.subr.mxu1 %v3889_v35  ;;  %932 = vmatpush1.msra.mxu0 %v3904_v10 }
 0x23c   :  { %2213 = vmatpush3.msra.mxu1 %v3905_v11  ;;  %933 = vmatprep.subr.mxu0 %v3906_v13 }
 0x23d   :  { %2214 = vmatprep.subr.mxu1 %v3889_v35  ;;  %934 = vmatpush1.msra.mxu0 %v3907_v14 }
 0x23e   :  { %967 = vmatprep.mubr.f32.mxu0 %v3889_v35  ;;  %2215 = vmatpush3.msra.mxu1 %v3908_v15 }
 0x23f   :  { %2216 = vmatprep.mubr.msk.f32.mxu1 %vm2493_vm1, %v3889_v35  ;;  %1070 = vmatprep.subr.mxu0 %v3909_v16 }
 0x240   :  { %2219 = vmatprep.subr.mxu1 %v3889_v35 }
 0x2de   :  { %v802_v18 = vpop.f32.mrf.mxu0  ;;  %v873_v19 = vpop.f32.mrf.mxu1 }
 0x2df   :  { %v803_v49 = vadd.f32 %v802_v18, %v3910_v21  ;;  %v874_v12 = vadd.f32 %v873_v19, %v3068_v24 }
 0x2e0   :  { %v804_v1 = vpop.f32.mrf.mxu0  ;;  %v2183_v29 = vpop.f32.mrf.mxu1 }
 0x2e1   :  { %v877_v47 = vadd.f32 %v803_v49, %v3911_v6  ;;  %v805_v5 = vadd.f32 %v804_v1, %v3053_v50 }
 0x2e3   :  { %v1900_v2 = vmul.f32 -1.442695, %v877_v47  ;;  %v884_v20 = vadd.f32 %v805_v5, %v3912_v3  ;;  %v3259_v5 = vld [vmem:[%s3813_s2 + $0x150] sm:$0xff]  ;;  %v3273_v3 = vld [vmem:[%s3813_s2 + $0x138] sm:$0xff] }
 0x2e5   :  { %2383 = vpow2.f32 %v1900_v2  ;;  %v1901_v7 = vmul.f32 -1.442695, %v884_v20  ;;  %v3245_v2 = vld [vmem:[%s3813_s2 + $0x168] sm:$0xff]  ;;  %v3287_v20 = vld [vmem:[%s3813_s2 + $0x120] sm:$0xff] }
 0x2e7   :  { %2385 = vpow2.f32 %v1901_v7  ;;  %v3301_v7 = vld [vmem:[%s3813_s2 + $0x108] sm:$0xff] }
 0x2f2   :  { %v2384_v63 = vpop.eup %2383 }
 0x2f3   :  { %v881_v23 = vadd.f32 1.0, %v2384_v63  ;;  %v3417_v63 = vld [vmem:[%s3813_s2 + $0x118] sm:$0xff] }
 0x2f4   :  { %v2386_v45 = vpop.eup %2385 }
 0x2f5   :  { %2387 = vrcp.f32 %v881_v23  ;;  %v888_v8 = vadd.f32 1.0, %v2386_v45  ;;  %v3425_v23 = vld [vmem:[%s3813_s2 + $0xf0] sm:$0xff]  ;;  %v3431_v45 = vld [vmem:[%s3813_s2 + $0x100] sm:$0xff] }
 0x2f7   :  { %2389 = vrcp.f32 %v888_v8  ;;  %v3437_v8 = vld [vmem:[%s3813_s2 + $0xe0] sm:$0xff] }
 0x302   :  { %v2388_v48 = vpop.eup %2387 }
 0x303   :  { %v891_v30 = vmul.f32 %v2388_v48, %v874_v12  ;;  %v3444_v12 = vld [vmem:[%s3813_s2 + $0xd8] sm:$0xff]  ;;  %v3450_v48 = vld [vmem:[%s3813_s2 + $0xe8] sm:$0xff] }
 0x304   :  { %v2390_v18 = vpop.eup %2389 }
 0x305   :  { %v892_v16 = vadd.f32 %v891_v30, %v3913_v17  ;;  %v894_v49 = vsub.f32 1.0, %v2390_v18  ;;  %v896_v6 = vmul.f32 %v2390_v18, %v3156_v4  ;;  %v3252_v4 = vld [vmem:[%s3813_s2 + $0x158] sm:$0xff]  ;;  %v3456_v30 = vld [vmem:[%s3813_s2 + $0xc8] sm:$0xff]  ;;  %v3463_v17 = vld [vmem:[%s3813_s2 + $0xc0] sm:$0xff] }
 0x306   :  { %v3475_v18 = vld [vmem:[%s3813_s2 + $0xb0] sm:$0xff] }
 0x307   :  { %2391 = vtanh.f32 %v892_v16  ;;  %v3469_v16 = vld [vmem:[%s3813_s2 + $0xd0] sm:$0xff] }
 0x314   :  { %v2392_v1 = vpop.eup %2391 }
 0x315   :  { %v895_v29 = vmul.f32 %v2392_v1, %v894_v49  ;;  %v3482_v49 = vld [vmem:[%s3813_s2 + $0xa8] sm:$0xff]  ;;  %v3488_v1 = vld [vmem:[%s3813_s2 + $0xb8] sm:$0xff] }
 0x317   :  { %v3236_v47 = vadd.f32 %v896_v6, %v895_v29  ;;  %v3494_v29 = vld [vmem:[%s3813_s2 + $0x98] sm:$0xff]  ;;  %v3501_v6 = vld [vmem:[%s3813_s2 + $0x90] sm:$0xff] }
 0x319   :  { %968 = vmatmul.mubr.f32.vlgmr.msra.gmra.mxu0 %v3236_v47  ;;  %2217 = vmatmul.mubr.f32.vlgmr.msra.gmra.mxu1 %v3236_v47  ;;  %v1753_v19 = vmul.f32 %v3074_v0, %v3236_v47 }
 0x31a   :  { %1071 = vmatpush1.msra.mxu0 %v3245_v2  ;;  %2220 = vmatpush3.msra.mxu1 %v2753_v40  ;;  %v3266_v40 = vld [vmem:[%s3813_s2 + $0x140] sm:$0xff] }
 0x31b   :  { %1763 = vadd.xlane.f32.xlu1 %v1753_v19  ;;  %1072 = vmatprep.subr.mxu0 %v3252_v4  ;;  %v3513_v19 = vld [vmem:[%s3813_s2 + $0x80] sm:$0xff] }
 0x31c   :  { %2221 = vmatprep.subr.mxu1 %v3889_v35  ;;  %1073 = vmatpush1.msra.mxu0 %v3259_v5 }
 0x31d   :  { %2222 = vmatpush3.msra.mxu1 %v2790_v46  ;;  %1074 = vmatprep.subr.mxu0 %v3266_v40  ;;  %v3280_v46 = vld [vmem:[%s3813_s2 + $0x128] sm:$0xff] }
 0x31e   :  { %2223 = vmatprep.subr.mxu1 %v3889_v35  ;;  %1075 = vmatpush1.msra.mxu0 %v3273_v3 }
 0x31f   :  { %2224 = vmatpush3.msra.mxu1 %v2826_v52  ;;  %1076 = vmatprep.subr.mxu0 %v3280_v46  ;;  %v3294_v52 = vld [vmem:[%s3813_s2 + $0x110] sm:$0xff] }
 0x320   :  { %2225 = vmatprep.subr.mxu1 %v3889_v35  ;;  %1077 = vmatpush1.msra.mxu0 %v3287_v20 }
 0x321   :  { %2226 = vmatpush3.msra.mxu1 %v2835_v53  ;;  %1078 = vmatprep.subr.mxu0 %v3294_v52  ;;  %v3308_v53 = vld [vmem:[%s3813_s2 + $0xf8] sm:$0xff] }
 0x322   :  { %2227 = vmatprep.subr.mxu1 %v3889_v35  ;;  %1079 = vmatpush1.msra.mxu0 %v3301_v7 }
 0x323   :  { %2228 = vmatpush3.msra.mxu1 %v2844_v54  ;;  %1080 = vmatprep.subr.mxu0 %v3308_v53 }
 0x324   :  { %2229 = vmatprep.subr.mxu1 %v3889_v35  ;;  %1081 = vmatpush1.msra.mxu0 %v2645_v22  ;;  %v3360_v22 = vld [vmem:[%s3813_s2 + $0x170] sm:$0xff] }
 0x325   :  { %2230 = vmatpush3.msra.mxu1 %v2853_v55  ;;  %1082 = vmatprep.subr.mxu0 %v2660_v25  ;;  %3914 = vst [vmem:[#allocation7_spill] sm:$0xff] %v3360_v22 }
 0x326   :  { %2231 = vmatprep.subr.mxu1 %v3889_v35  ;;  %1083 = vmatpush1.msra.mxu0 %v2666_v26 }
 0x327   :  { %2232 = vmatpush3.msra.mxu1 %v2864_v56  ;;  %1084 = vmatprep.subr.mxu0 %v2672_v27 }
 0x328   :  { %2233 = vmatprep.subr.mxu1 %v3889_v35  ;;  %1085 = vmatpush1.msra.mxu0 %v2680_v28 }
 0x329   :  { %2234 = vmatpush3.msra.mxu1 %v2873_v57  ;;  %1086 = vmatprep.subr.mxu0 %v2695_v31 }
 0x32a   :  { %2235 = vmatprep.subr.mxu1 %v3889_v35  ;;  %1087 = vmatpush1.msra.mxu0 %v2701_v32  ;;  %v3915_v32 = vld [vmem:[#allocation20_spill] sm:$0xff] }
 0x32b   :  { %2236 = vmatpush3.msra.mxu1 %v2883_v58  ;;  %1088 = vmatprep.subr.mxu0 %v2707_v33  ;;  %v3917_v58 = vld [vmem:[#allocation32_spill] sm:$0xff] }
 0x32c   :  { %2237 = vmatprep.subr.mxu1 %v3889_v35  ;;  %1089 = vmatpush1.msra.mxu0 %v2715_v34 }
 0x32d   :  { %2238 = vmatpush3.msra.mxu1 %v2892_v59  ;;  %1090 = vmatprep.subr.mxu0 %v2727_v36 }
 0x32e   :  { %2239 = vmatprep.subr.mxu1 %v3889_v35  ;;  %1091 = vmatpush1.msra.mxu0 %v2733_v37  ;;  %v3916_v37 = vld [vmem:[#allocation21_spill] sm:$0xff] }
 0x32f   :  { %2240 = vmatpush3.msra.mxu1 %v2902_v60  ;;  %1092 = vmatprep.subr.mxu0 %v2739_v38 }
 0x330   :  { %2241 = vmatprep.subr.mxu1 %v3889_v35  ;;  %1093 = vmatpush1.msra.mxu0 %v2748_v39 }
 0x331   :  { %2242 = vmatpush3.msra.mxu1 %v2911_v61  ;;  %1094 = vmatprep.subr.mxu0 %v2763_v42 }
 0x332   :  { %2243 = vmatprep.subr.mxu1 %v3889_v35  ;;  %1095 = vmatpush1.msra.mxu0 %v2769_v43 }
 0x333   :  { %2244 = vmatpush3.msra.mxu1 %v2920_v62  ;;  %1096 = vmatprep.subr.mxu0 %v2777_v44 }
 0x334   :  { %2245 = vmatprep.subr.mxu1 %v3889_v35  ;;  %1097 = vmatpush1.msra.mxu0 %v3890_v41 }
 0x335   :  { %2246 = vmatpush3.msra.mxu1 %v3891_v51  ;;  %1098 = vmatprep.subr.mxu0 %v3903_v9 }
 0x336   :  { %2247 = vmatprep.subr.mxu1 %v3889_v35  ;;  %1099 = vmatpush1.msra.mxu0 %v3904_v10 }
 0x337   :  { %2248 = vmatpush3.msra.mxu1 %v3905_v11  ;;  %1100 = vmatprep.subr.mxu0 %v3906_v13  ;;  %v3381_v11 = vld [vmem:[%s3813_s2 + $0x178] sm:$0xff]  ;;  %v3390_v13 = vld [vmem:[%s3813_s2 + $0x160] sm:$0xff] }
 0x338   :  { %2249 = vmatprep.subr.mxu1 %v3889_v35  ;;  %1101 = vmatpush1.msra.mxu0 %v3907_v14  ;;  %v3399_v14 = vld [vmem:[%s3813_s2 + $0x148] sm:$0xff] }
 0x339   :  { %1134 = vmatprep.mubr.f32.mxu0 %v3889_v35  ;;  %2250 = vmatpush3.msra.mxu1 %v3908_v15  ;;  %v3408_v15 = vld [vmem:[%s3813_s2 + $0x130] sm:$0xff] }
 0x33a   :  { %2251 = vmatprep.mubr.msk.f32.mxu1 %vm2493_vm1, %v3889_v35  ;;  %1237 = vmatprep.subr.mxu0 %v3360_v22 }
 0x33b   :  { %2254 = vmatprep.subr.mxu1 %v3889_v35 }
 0x3d9   :  { %v969_v25 = vpop.f32.mrf.mxu0  ;;  %v1040_v26 = vpop.f32.mrf.mxu1 }
 0x3da   :  { %v970_v27 = vadd.f32 %v969_v25, %v3910_v21  ;;  %v1041_v55 = vadd.f32 %v1040_v26, %v3068_v24  ;;  %v3520_v25 = vld [vmem:[%s3813_s2 + $0x78] sm:$0xff]  ;;  %v3526_v26 = vld [vmem:[%s3813_s2 + $0x88] sm:$0xff] }
 0x3db   :  { %v971_v28 = vpop.f32.mrf.mxu0  ;;  %v2218_v31 = vpop.f32.mrf.mxu1 }
 0x3dc   :  { %v1044_v33 = vadd.f32 %v970_v27, %v3915_v32  ;;  %v972_v36 = vadd.f32 %v971_v28, %v3053_v50  ;;  %v3532_v27 = vld [vmem:[%s3813_s2 + $0x68] sm:$0xff]  ;;  %v3539_v28 = vld [vmem:[%s3813_s2 + $0x60] sm:$0xff]  ;;  %v3545_v31 = vld [vmem:[%s3813_s2 + $0x70] sm:$0xff] }
 0x3dd   :  { %v3551_v32 = vld [vmem:[%s3813_s2 + $0x50] sm:$0xff] }
 0x3de   :  { %v1902_v34 = vmul.f32 -1.442695, %v1044_v33  ;;  %v1051_v38 = vadd.f32 %v972_v36, %v3916_v37  ;;  %v3558_v33 = vld [vmem:[%s3813_s2 + $0x48] sm:$0xff]  ;;  %v3570_v36 = vld [vmem:[%s3813_s2 + $0x38] sm:$0xff]  ;;  %v3577_v37 = vld [vmem:[%s3813_s2 + $0x30] sm:$0xff] }
 0x3e0   :  { %2393 = vpow2.f32 %v1902_v34  ;;  %v1903_v39 = vmul.f32 -1.442695, %v1051_v38  ;;  %v3564_v34 = vld [vmem:[%s3813_s2 + $0x58] sm:$0xff]  ;;  %v3583_v38 = vld [vmem:[%s3813_s2 + $0x40] sm:$0xff] }
 0x3e2   :  { %2395 = vpow2.f32 %v1903_v39  ;;  %v3589_v39 = vld [vmem:[%s3813_s2 + $0x20] sm:$0xff] }
 0x3e3   :  { %3918 = vst [vmem:[#allocation12_spill] sm:$0xff] %v3589_v39 }
 0x3ed   :  { %v2394_v42 = vpop.eup %2393 }
 0x3ee   :  { %v1048_v43 = vadd.f32 1.0, %v2394_v42  ;;  %v3596_v42 = vld [vmem:[%s3813_s2 + $0x18] sm:$0xff] }
 0x3ef   :  { %v2396_v44 = vpop.eup %2395  ;;  %3919 = vst [vmem:[#allocation16_spill] sm:$0xff] %v3596_v42 }
 0x3f0   :  { %2397 = vrcp.f32 %v1048_v43  ;;  %v1055_v54 = vadd.f32 1.0, %v2396_v44  ;;  %v3602_v43 = vld [vmem:[%s3813_s2 + $0x28] sm:$0xff] }
 0x3f1   :  { %3920 = vst [vmem:[#allocation17_spill] sm:$0xff] %v3602_v43  ;;  %v3608_v44 = vld [vmem:[%s3813_s2 + $0x8] sm:$0xff] }
 0x3f2   :  { %2399 = vrcp.f32 %v1055_v54  ;;  %3921 = vst [vmem:[#allocation26_spill] sm:$0xff] %v3608_v44  ;;  %v3615_v54 = vld [vmem:[%s3813_s2] sm:$0xff] }
 0x3f3   :  { %3922 = vst [vmem:[#allocation8_spill] sm:$0xff] %v3615_v54 }
 0x3fd   :  { %v2398_v56 = vpop.eup %2397 }
 0x3fe   :  { %v1058_v57 = vmul.f32 %v2398_v56, %v1041_v55  ;;  %v3622_v55 = vld [vmem:[%s3813_s2 + $0x10] sm:$0xff] }
 0x3ff   :  { %v2400_v60 = vpop.eup %2399  ;;  %3923 = vst [vmem:[#allocation9_spill] sm:$0xff] %v3622_v55 }
 0x400   :  { %v1059_v59 = vadd.f32 %v1058_v57, %v3917_v58  ;;  %v1061_v61 = vsub.f32 1.0, %v2400_v60  ;;  %v1063_v51 = vmul.f32 %v2400_v60, %v3236_v47  ;;  %v3507_v47 = vld [vmem:[%s3813_s2 + $0xa0] sm:$0xff] }
 0x402   :  { %2401 = vtanh.f32 %v1059_v59 }
 0x40f   :  { %v2402_v62 = vpop.eup %2401 }
 0x410   :  { %v1062_v41 = vmul.f32 %v2402_v62, %v1061_v61  ;;  %v3924_v61 = vld [vmem:[#allocation22_spill] sm:$0xff] }
 0x412   :  { %v3371_v9 = vadd.f32 %v1063_v51, %v1062_v41 }
 0x414   :  { %1135 = vmatmul.mubr.f32.vlgmr.msra.gmra.mxu0 %v3371_v9  ;;  %2252 = vmatmul.mubr.f32.vlgmr.msra.gmra.mxu1 %v3371_v9  ;;  %v1754_v10 = vmul.f32 %v3074_v0, %v3371_v9 }
 0x415   :  { %1238 = vmatpush1.msra.mxu0 %v3245_v2  ;;  %2255 = vmatpush3.msra.mxu1 %v3381_v11 }
 0x416   :  { %1765 = vadd.xlane.f32.xlu1 %v1754_v10  ;;  %1239 = vmatprep.subr.mxu0 %v3252_v4  ;;  %v3925_v10 = vld [vmem:[#allocation23_spill] sm:$0xff] }
 0x417   :  { %2256 = vmatprep.subr.mxu1 %v3889_v35  ;;  %1240 = vmatpush1.msra.mxu0 %v3259_v5 }
 0x418   :  { %2257 = vmatpush3.msra.mxu1 %v3390_v13  ;;  %1241 = vmatprep.subr.mxu0 %v3266_v40 }
 0x419   :  { %2258 = vmatprep.subr.mxu1 %v3889_v35  ;;  %1242 = vmatpush1.msra.mxu0 %v3273_v3 }
 0x41a   :  { %2259 = vmatpush3.msra.mxu1 %v3399_v14  ;;  %1243 = vmatprep.subr.mxu0 %v3280_v46 }
 0x41b   :  { %2260 = vmatprep.subr.mxu1 %v3889_v35  ;;  %1244 = vmatpush1.msra.mxu0 %v3287_v20 }
 0x41c   :  { %2261 = vmatpush3.msra.mxu1 %v3408_v15  ;;  %1245 = vmatprep.subr.mxu0 %v3294_v52 }
 0x41d   :  { %2262 = vmatprep.subr.mxu1 %v3889_v35  ;;  %1246 = vmatpush1.msra.mxu0 %v3301_v7 }
 0x41e   :  { %2263 = vmatpush3.msra.mxu1 %v3417_v63  ;;  %1247 = vmatprep.subr.mxu0 %v3308_v53 }
 0x41f   :  { %2264 = vmatprep.subr.mxu1 %v3889_v35  ;;  %1248 = vmatpush1.msra.mxu0 %v3425_v23 }
 0x420   :  { %2265 = vmatpush3.msra.mxu1 %v3431_v45  ;;  %1249 = vmatprep.subr.mxu0 %v3437_v8 }
 0x421   :  { %2266 = vmatprep.subr.mxu1 %v3889_v35  ;;  %1250 = vmatpush1.msra.mxu0 %v3444_v12 }
 0x422   :  { %2267 = vmatpush3.msra.mxu1 %v3450_v48  ;;  %1251 = vmatprep.subr.mxu0 %v3456_v30 }
 0x423   :  { %2268 = vmatprep.subr.mxu1 %v3889_v35  ;;  %1252 = vmatpush1.msra.mxu0 %v3463_v17 }
 0x424   :  { %2269 = vmatpush3.msra.mxu1 %v3469_v16  ;;  %1253 = vmatprep.subr.mxu0 %v3475_v18 }
 0x425   :  { %2270 = vmatprep.subr.mxu1 %v3889_v35  ;;  %1254 = vmatpush1.msra.mxu0 %v3482_v49 }
 0x426   :  { %2271 = vmatpush3.msra.mxu1 %v3488_v1  ;;  %1255 = vmatprep.subr.mxu0 %v3494_v29 }
 0x427   :  { %2272 = vmatprep.subr.mxu1 %v3889_v35  ;;  %1256 = vmatpush1.msra.mxu0 %v3501_v6 }
 0x428   :  { %2273 = vmatpush3.msra.mxu1 %v3507_v47  ;;  %1257 = vmatprep.subr.mxu0 %v3513_v19 }
 0x429   :  { %2274 = vmatprep.subr.mxu1 %v3889_v35  ;;  %1258 = vmatpush1.msra.mxu0 %v3520_v25 }
 0x42a   :  { %2275 = vmatpush3.msra.mxu1 %v3526_v26  ;;  %1259 = vmatprep.subr.mxu0 %v3532_v27 }
 0x42b   :  { %2276 = vmatprep.subr.mxu1 %v3889_v35  ;;  %1260 = vmatpush1.msra.mxu0 %v3539_v28 }
 0x42c   :  { %2277 = vmatpush3.msra.mxu1 %v3545_v31  ;;  %1261 = vmatprep.subr.mxu0 %v3551_v32 }
 0x42d   :  { %2278 = vmatprep.subr.mxu1 %v3889_v35  ;;  %1262 = vmatpush1.msra.mxu0 %v3558_v33 }
 0x42e   :  { %2279 = vmatpush3.msra.mxu1 %v3564_v34  ;;  %1263 = vmatprep.subr.mxu0 %v3570_v36 }
 0x42f   :  { %2280 = vmatprep.subr.mxu1 %v3889_v35  ;;  %1264 = vmatpush1.msra.mxu0 %v3577_v37 }
 0x430   :  { %2281 = vmatpush3.msra.mxu1 %v3583_v38  ;;  %1265 = vmatprep.subr.mxu0 %v3589_v39 }
 0x431   :  { %2282 = vmatprep.subr.mxu1 %v3889_v35  ;;  %1266 = vmatpush1.msra.mxu0 %v3596_v42 }
 0x432   :  { %2283 = vmatpush3.msra.mxu1 %v3602_v43  ;;  %1267 = vmatprep.subr.mxu0 %v3608_v44 }
 0x433   :  { %2284 = vmatprep.subr.mxu1 %v3889_v35  ;;  %1268 = vmatpush1.msra.mxu0 %v3615_v54 }
 0x434   :  { %1301 = vmatprep.mubr.f32.mxu0 %v3889_v35  ;;  %2285 = vmatpush3.msra.mxu1 %v3622_v55 }
 0x435   :  { %2286 = vmatprep.mubr.msk.f32.mxu1 %vm2493_vm1, %v3889_v35  ;;  %1404 = vmatprep.subr.mxu0 %v3360_v22 }
 0x436   :  { %2289 = vmatprep.subr.mxu1 %v3889_v35 }
 0x4d4   :  { %v1136_v56 = vpop.f32.mrf.mxu0  ;;  %v1207_v57 = vpop.f32.mrf.mxu1 }
 0x4d5   :  { %v1137_v58 = vadd.f32 %v1136_v56, %v3910_v21  ;;  %v1208_v39 = vadd.f32 %v1207_v57, %v3068_v24  ;;  %v3933_v57 = vld [vmem:[#allocation7_spill] sm:$0xff] }
 0x4d6   :  { %v1138_v59 = vpop.f32.mrf.mxu0  ;;  %v2253_v60 = vpop.f32.mrf.mxu1 }
 0x4d7   :  { %v1211_v62 = vadd.f32 %v1137_v58, %v3924_v61  ;;  %v1139_v51 = vadd.f32 %v1138_v59, %v3053_v50  ;;  %v3926_v60 = vld [vmem:[#allocation35_spill] sm:$0xff] }
 0x4d9   :  { %v1904_v41 = vmul.f32 -1.442695, %v1211_v62  ;;  %v1218_v55 = vadd.f32 %v1139_v51, %v3925_v10 }
 0x4db   :  { %2403 = vpow2.f32 %v1904_v41  ;;  %v1905_v54 = vmul.f32 -1.442695, %v1218_v55 }
 0x4dd   :  { %2405 = vpow2.f32 %v1905_v54 }
 0x4e8   :  { %v2404_v44 = vpop.eup %2403 }
 0x4e9   :  { %v1215_v22 = vadd.f32 1.0, %v2404_v44  ;;  %v3932_v44 = vld [vmem:[#allocation9_spill] sm:$0xff] }
 0x4ea   :  { %v2406_v43 = vpop.eup %2405 }
 0x4eb   :  { %2407 = vrcp.f32 %v1215_v22  ;;  %v1222_v42 = vadd.f32 1.0, %v2406_v43  ;;  %v3931_v43 = vld [vmem:[#allocation8_spill] sm:$0xff] }
 0x4ed   :  { %2409 = vrcp.f32 %v1222_v42  ;;  %v3930_v42 = vld [vmem:[#allocation26_spill] sm:$0xff] }
 0x4f8   :  { %v2408_v56 = vpop.eup %2407 }
 0x4f9   :  { %v1225_v21 = vmul.f32 %v2408_v56, %v1208_v39  ;;  %v3929_v39 = vld [vmem:[#allocation17_spill] sm:$0xff]  ;;  %v3934_v56 = vld [vmem:[#allocation30_spill] sm:$0xff] }
 0x4fa   :  { %v2410_v61 = vpop.eup %2409 }
 0x4fb   :  { %v1226_v58 = vadd.f32 %v1225_v21, %v3926_v60  ;;  %v1228_v59 = vsub.f32 1.0, %v2410_v61  ;;  %v1230_v55 = vmul.f32 %v2410_v61, %v3371_v9  ;;  %v3927_v21 = vld [vmem:[#allocation12_spill] sm:$0xff] }
 0x4fc   :  { %v3928_v9 = vld [vmem:[#allocation16_spill] sm:$0xff] }
 0x4fd   :  { %2411 = vtanh.f32 %v1226_v58 }
 0x50a   :  { %v2412_v62 = vpop.eup %2411 }
 0x50b   :  { %v1229_v41 = vmul.f32 %v2412_v62, %v1228_v59  ;;  %v3935_v59 = vld [vmem:[#allocation24_spill] sm:$0xff] }
 0x50d   :  { %v3636_v54 = vadd.f32 %v1230_v55, %v1229_v41 }
 0x50f   :  { %1302 = vmatmul.mubr.f32.vlgmr.msra.gmra.mxu0 %v3636_v54  ;;  %2287 = vmatmul.mubr.f32.vlgmr.msra.gmra.mxu1 %v3636_v54  ;;  %v1755_v22 = vmul.f32 %v3074_v0, %v3636_v54 }
 0x510   :  { %1405 = vmatpush1.msra.mxu0 %v3245_v2  ;;  %2290 = vmatpush3.msra.mxu1 %v3381_v11 }
 0x511   :  { %1767 = vadd.xlane.f32.xlu0 %v1755_v22  ;;  %1406 = vmatprep.subr.mxu0 %v3252_v4  ;;  %v3936_v22 = vld [vmem:[#allocation25_spill] sm:$0xff] }
 0x512   :  { %2291 = vmatprep.subr.mxu1 %v3889_v35  ;;  %1407 = vmatpush1.msra.mxu0 %v3259_v5 }
 0x513   :  { %2292 = vmatpush3.msra.mxu1 %v3390_v13  ;;  %1408 = vmatprep.subr.mxu0 %v3266_v40 }
 0x514   :  { %2293 = vmatprep.subr.mxu1 %v3889_v35  ;;  %1409 = vmatpush1.msra.mxu0 %v3273_v3 }
 0x515   :  { %2294 = vmatpush3.msra.mxu1 %v3399_v14  ;;  %1410 = vmatprep.subr.mxu0 %v3280_v46 }
 0x516   :  { %2295 = vmatprep.subr.mxu1 %v3889_v35  ;;  %1411 = vmatpush1.msra.mxu0 %v3287_v20 }
 0x517   :  { %2296 = vmatpush3.msra.mxu1 %v3408_v15  ;;  %1412 = vmatprep.subr.mxu0 %v3294_v52 }
 0x518   :  { %2297 = vmatprep.subr.mxu1 %v3889_v35  ;;  %1413 = vmatpush1.msra.mxu0 %v3301_v7 }
 0x519   :  { %2298 = vmatpush3.msra.mxu1 %v3417_v63  ;;  %1414 = vmatprep.subr.mxu0 %v3308_v53 }
 0x51a   :  { %2299 = vmatprep.subr.mxu1 %v3889_v35  ;;  %1415 = vmatpush1.msra.mxu0 %v3425_v23 }
 0x51b   :  { %2300 = vmatpush3.msra.mxu1 %v3431_v45  ;;  %1416 = vmatprep.subr.mxu0 %v3437_v8 }
 0x51c   :  { %2301 = vmatprep.subr.mxu1 %v3889_v35  ;;  %1417 = vmatpush1.msra.mxu0 %v3444_v12 }
 0x51d   :  { %2302 = vmatpush3.msra.mxu1 %v3450_v48  ;;  %1418 = vmatprep.subr.mxu0 %v3456_v30 }
 0x51e   :  { %2303 = vmatprep.subr.mxu1 %v3889_v35  ;;  %1419 = vmatpush1.msra.mxu0 %v3463_v17 }
 0x51f   :  { %2304 = vmatpush3.msra.mxu1 %v3469_v16  ;;  %1420 = vmatprep.subr.mxu0 %v3475_v18 }
 0x520   :  { %2305 = vmatprep.subr.mxu1 %v3889_v35  ;;  %1421 = vmatpush1.msra.mxu0 %v3482_v49 }
 0x521   :  { %2306 = vmatpush3.msra.mxu1 %v3488_v1  ;;  %1422 = vmatprep.subr.mxu0 %v3494_v29 }
 0x522   :  { %2307 = vmatprep.subr.mxu1 %v3889_v35  ;;  %1423 = vmatpush1.msra.mxu0 %v3501_v6 }
 0x523   :  { %2308 = vmatpush3.msra.mxu1 %v3507_v47  ;;  %1424 = vmatprep.subr.mxu0 %v3513_v19 }
 0x524   :  { %2309 = vmatprep.subr.mxu1 %v3889_v35  ;;  %1425 = vmatpush1.msra.mxu0 %v3520_v25 }
 0x525   :  { %2310 = vmatpush3.msra.mxu1 %v3526_v26  ;;  %1426 = vmatprep.subr.mxu0 %v3532_v27 }
 0x526   :  { %2311 = vmatprep.subr.mxu1 %v3889_v35  ;;  %1427 = vmatpush1.msra.mxu0 %v3539_v28 }
 0x527   :  { %2312 = vmatpush3.msra.mxu1 %v3545_v31  ;;  %1428 = vmatprep.subr.mxu0 %v3551_v32 }
 0x528   :  { %2313 = vmatprep.subr.mxu1 %v3889_v35  ;;  %1429 = vmatpush1.msra.mxu0 %v3558_v33 }
 0x529   :  { %2314 = vmatpush3.msra.mxu1 %v3564_v34  ;;  %1430 = vmatprep.subr.mxu0 %v3570_v36 }
 0x52a   :  { %2315 = vmatprep.subr.mxu1 %v3889_v35  ;;  %1431 = vmatpush1.msra.mxu0 %v3577_v37 }
 0x52b   :  { %2316 = vmatpush3.msra.mxu1 %v3583_v38  ;;  %1432 = vmatprep.subr.mxu0 %v3927_v21 }
 0x52c   :  { %2317 = vmatprep.subr.mxu1 %v3889_v35  ;;  %1433 = vmatpush1.msra.mxu0 %v3928_v9 }
 0x52d   :  { %2318 = vmatpush3.msra.mxu1 %v3929_v39  ;;  %1434 = vmatprep.subr.mxu0 %v3930_v42 }
 0x52e   :  { %2319 = vmatprep.subr.mxu1 %v3889_v35  ;;  %1435 = vmatpush1.msra.mxu0 %v3931_v43 }
 0x52f   :  { %1468 = vmatprep.mubr.f32.mxu0 %v3889_v35  ;;  %2320 = vmatpush3.msra.mxu1 %v3932_v44 }
 0x530   :  { %2321 = vmatprep.mubr.msk.f32.mxu1 %vm2493_vm1, %v3889_v35  ;;  %1571 = vmatprep.subr.mxu0 %v3933_v57 }
 0x531   :  { %2324 = vmatprep.subr.mxu1 %v3889_v35 }
 0x5cf   :  { %v1303_v51 = vpop.f32.mrf.mxu0  ;;  %v1374_v10 = vpop.f32.mrf.mxu1 }
 0x5d0   :  { %v1304_v60 = vadd.f32 %v1303_v51, %v3934_v56  ;;  %v1375_v21 = vadd.f32 %v1374_v10, %v3068_v24 }
 0x5d1   :  { %v1305_v58 = vpop.f32.mrf.mxu0  ;;  %v2288_v61 = vpop.f32.mrf.mxu1 }
 0x5d2   :  { %v1378_v62 = vadd.f32 %v1304_v60, %v3935_v59  ;;  %v1306_v55 = vadd.f32 %v1305_v58, %v3053_v50  ;;  %v3937_v61 = vld [vmem:[#allocation34_spill] sm:$0xff] }
 0x5d4   :  { %v1906_v41 = vmul.f32 -1.442695, %v1378_v62  ;;  %v1385_v44 = vadd.f32 %v1306_v55, %v3936_v22 }
 0x5d6   :  { %2413 = vpow2.f32 %v1906_v41  ;;  %v1907_v43 = vmul.f32 -1.442695, %v1385_v44 }
 0x5d8   :  { %2415 = vpow2.f32 %v1907_v43 }
 0x5e3   :  { %v2414_v42 = vpop.eup %2413 }
 0x5e4   :  { %v1382_v57 = vadd.f32 1.0, %v2414_v42 }
 0x5e5   :  { %v2416_v39 = vpop.eup %2415 }
 0x5e6   :  { %2417 = vrcp.f32 %v1382_v57  ;;  %v1389_v9 = vadd.f32 1.0, %v2416_v39 }
 0x5e8   :  { %2419 = vrcp.f32 %v1389_v9 }
 0x5f3   :  { %v2418_v51 = vpop.eup %2417 }
 0x5f4   :  { %v1392_v56 = vmul.f32 %v2418_v51, %v1375_v21  ;;  %v3948_v21 = vld [vmem:[#allocation29_spill] sm:$0xff] }
 0x5f5   :  { %v2420_v59 = vpop.eup %2419 }
 0x5f6   :  { %v1393_v60 = vadd.f32 %v1392_v56, %v3937_v61  ;;  %v1395_v58 = vsub.f32 1.0, %v2420_v59  ;;  %v1397_v44 = vmul.f32 %v2420_v59, %v3636_v54  ;;  %v3949_v56 = vld [vmem:[#allocation31_spill] sm:$0xff] }
 0x5f8   :  { %2421 = vtanh.f32 %v1393_v60 }
 0x605   :  { %v2422_v62 = vpop.eup %2421 }
 0x606   :  { %v1396_v41 = vmul.f32 %v2422_v62, %v1395_v58 }
 0x608   :  { %v3716_v43 = vadd.f32 %v1397_v44, %v1396_v41  ;;  %v3950_v41 = vld [vmem:[#allocation36_spill] sm:$0xff] }
 0x60a   :  { %1469 = vmatmul.mubr.f32.vlgmr.msra.gmra.mxu0 %v3716_v43  ;;  %2322 = vmatmul.mubr.f32.vlgmr.msra.gmra.mxu1 %v3716_v43  ;;  %v1756_v39 = vmul.f32 %v3074_v0, %v3716_v43  ;;  %v3938_v0 = vld [vmem:[#allocation12_spill] sm:$0xff] }
 0x60b   :  { %1572 = vmatpush1.msra.mxu0 %v3245_v2  ;;  %2325 = vmatpush3.msra.mxu1 %v3381_v11  ;;  %v3939_v2 = vld [vmem:[#allocation16_spill] sm:$0xff] }
 0x60c   :  { %1769 = vadd.xlane.f32.xlu1 %v1756_v39  ;;  %1573 = vmatprep.subr.mxu0 %v3252_v4  ;;  %v3940_v4 = vld [vmem:[#allocation17_spill] sm:$0xff] }
 0x60d   :  { %2326 = vmatprep.subr.mxu1 %v3889_v35  ;;  %1574 = vmatpush1.msra.mxu0 %v3259_v5  ;;  %v3941_v5 = vld [vmem:[#allocation26_spill] sm:$0xff] }
 0x60e   :  { %2327 = vmatpush3.msra.mxu1 %v3390_v13  ;;  %1575 = vmatprep.subr.mxu0 %v3266_v40  ;;  %v3942_v40 = vld [vmem:[#allocation8_spill] sm:$0xff] }
 0x60f   :  { %2328 = vmatprep.subr.mxu1 %v3889_v35  ;;  %1576 = vmatpush1.msra.mxu0 %v3273_v3  ;;  %v3943_v3 = vld [vmem:[#allocation9_spill] sm:$0xff] }
 0x610   :  { %2329 = vmatpush3.msra.mxu1 %v3399_v14  ;;  %1577 = vmatprep.subr.mxu0 %v3280_v46  ;;  %v2494_v46 = vmov 0  }
 0x611   :  { %2330 = vmatprep.subr.mxu1 %v3889_v35  ;;  %1578 = vmatpush1.msra.mxu0 %v3287_v20  ;;  %v12_v20 = vstv %s3817_s6 }
 0x612   :  { %2331 = vmatpush3.msra.mxu1 %v3408_v15  ;;  %1579 = vmatprep.subr.mxu0 %v3294_v52  ;;  %13 = vst [vmem:[#allocation5] sm:$0x1] %v12_v20  ;;  %v3945_v15 = vld [vmem:[#allocation27_spill] sm:$0xff] }
 0x613   :  { %2332 = vmatprep.subr.mxu1 %v3889_v35  ;;  %1580 = vmatpush1.msra.mxu0 %v3301_v7 }
 0x614   :  { %2333 = vmatpush3.msra.mxu1 %v3417_v63  ;;  %1581 = vmatprep.subr.mxu0 %v3308_v53  ;;  %v3944_v53 = vld [vmem:[#allocation30_spill] sm:$0xff] }
 0x615   :  { %2334 = vmatprep.subr.mxu1 %v3889_v35  ;;  %1582 = vmatpush1.msra.mxu0 %v3425_v23 }
 0x616   :  { %2335 = vmatpush3.msra.mxu1 %v3431_v45  ;;  %1583 = vmatprep.subr.mxu0 %v3437_v8 }
 0x617   :  { %2336 = vmatprep.subr.mxu1 %v3889_v35  ;;  %1584 = vmatpush1.msra.mxu0 %v3444_v12 }
 0x618   :  { %2337 = vmatpush3.msra.mxu1 %v3450_v48  ;;  %1585 = vmatprep.subr.mxu0 %v3456_v30 }
 0x619   :  { %2338 = vmatprep.subr.mxu1 %v3889_v35  ;;  %1586 = vmatpush1.msra.mxu0 %v3463_v17 }
 0x61a   :  { %2339 = vmatpush3.msra.mxu1 %v3469_v16  ;;  %1587 = vmatprep.subr.mxu0 %v3475_v18 }
 0x61b   :  { %2340 = vmatprep.subr.mxu1 %v3889_v35  ;;  %1588 = vmatpush1.msra.mxu0 %v3482_v49 }
 0x61c   :  { %2341 = vmatpush3.msra.mxu1 %v3488_v1  ;;  %1589 = vmatprep.subr.mxu0 %v3494_v29  ;;  %v3947_v29 = vld [vmem:[#allocation37_spill] sm:$0xff] }
 0x61d   :  { %2342 = vmatprep.subr.mxu1 %v3889_v35  ;;  %1590 = vmatpush1.msra.mxu0 %v3501_v6 }
 0x61e   :  { %2343 = vmatpush3.msra.mxu1 %v3507_v47  ;;  %1591 = vmatprep.subr.mxu0 %v3513_v19 }
 0x61f   :  { %2344 = vmatprep.subr.mxu1 %v3889_v35  ;;  %1592 = vmatpush1.msra.mxu0 %v3520_v25 }
 0x620   :  { %2345 = vmatpush3.msra.mxu1 %v3526_v26  ;;  %1593 = vmatprep.subr.mxu0 %v3532_v27 }
 0x621   :  { %2346 = vmatprep.subr.mxu1 %v3889_v35  ;;  %1594 = vmatpush1.msra.mxu0 %v3539_v28 }
 0x622   :  { %2347 = vmatpush3.msra.mxu1 %v3545_v31  ;;  %1595 = vmatprep.subr.mxu0 %v3551_v32  ;;  %v2491_v31 = vld [vmem:[%s3816_s5] ss:$0 sm:$0xff] }
 0x623   :  { %2348 = vmatprep.subr.mxu1 %v3889_v35  ;;  %1596 = vmatpush1.msra.mxu0 %v3558_v33  ;;  %v1913_v33 = vld [vmem:[#allocation5] ss:$0 sm:$0xff] }
 0x624   :  { %2349 = vmatpush3.msra.mxu1 %v3564_v34  ;;  %1597 = vmatprep.subr.mxu0 %v3570_v36 }
 0x625   :  { %2350 = vmatprep.subr.mxu1 %v3889_v35  ;;  %1598 = vmatpush1.msra.mxu0 %v3577_v37 }
 0x626   :  { %2351 = vmatpush3.msra.mxu1 %v3583_v38  ;;  %1599 = vmatprep.subr.mxu0 %v3938_v0 }
 0x627   :  { %2352 = vmatprep.subr.mxu1 %v3889_v35  ;;  %1600 = vmatpush1.msra.mxu0 %v3939_v2 }
 0x628   :  { %2353 = vmatpush3.msra.mxu1 %v3940_v4  ;;  %1601 = vmatprep.subr.mxu0 %v3941_v5 }
 0x629   :  { %2354 = vmatprep.subr.mxu1 %v3889_v35  ;;  %1602 = vmatpush1.msra.mxu0 %v3942_v40  ;;  %v1760_v40 = vpop.xlane.xlu0 %1759 }
 0x62a   :  { %1635 = vmatprep.mubr.f32.mxu0 %v3889_v35  ;;  %2355 = vmatpush3.msra.mxu1 %v3943_v3 }
 0x62b   :  { %2356 = vmatprep.mubr.msk.f32.mxu1 %vm2493_vm1, %v3889_v35  ;;  %2362 = vset.pattern.permute.xlu0 %v2494_v46  ;;  %v3946_v35 = vld [vmem:[#allocation28_spill] sm:$0xff]  ;;  %vm1874_vm1 = vcmask 64512  }
 0x62d   :  { %v1762_v3 = vpop.xlane.xlu0 %1761 }
 0x631   :  { %v1768_v46 = vpop.xlane.xlu0 %1767 }
 0x6ca   :  { %v1470_v52 = vpop.f32.mrf.mxu0  ;;  %v1541_v7 = vpop.f32.mrf.mxu1 }
 0x6cb   :  { %v1471_v11 = vadd.f32 %v1470_v52, %v3944_v53  ;;  %v1542_v18 = vadd.f32 %v1541_v7, %v3068_v24 }
 0x6cc   :  { %v1472_v13 = vpop.f32.mrf.mxu0  ;;  %v2323_v14 = vpop.f32.mrf.mxu1 }
 0x6cd   :  { %v1545_v63 = vadd.f32 %v1471_v11, %v3945_v15  ;;  %v1473_v45 = vadd.f32 %v1472_v13, %v3053_v50  ;;  %v3951_v11 = vlaneseq }
 0x6cf   :  { %v1908_v23 = vmul.f32 -1.442695, %v1545_v63  ;;  %v1552_v8 = vadd.f32 %v1473_v45, %v3946_v35  ;;  %v1826_v13 = vand.u32 127, %v3951_v11  ;;  %v3952_v45 = vld [vmem:[#allocation15_spill] sm:$0xff] }
 0x6d1   :  { %2423 = vpow2.f32 %v1908_v23  ;;  %v1909_v12 = vmul.f32 -1.442695, %v1552_v8  ;;  %v1829_v35 = vsub.s32 %v1826_v13, %v3952_v45 }
 0x6d3   :  { %2425 = vpow2.f32 %v1909_v12 }
 0x6de   :  { %v2424_v48 = vpop.eup %2423 }
 0x6df   :  { %v1549_v30 = vadd.f32 1.0, %v2424_v48 }
 0x6e0   :  { %v2426_v17 = vpop.eup %2425 }
 0x6e1   :  { %2427 = vrcp.f32 %v1549_v30  ;;  %v1556_v16 = vadd.f32 1.0, %v2426_v17 }
 0x6e3   :  { %2429 = vrcp.f32 %v1556_v16 }
 0x6ee   :  { %v2428_v49 = vpop.eup %2427 }
 0x6ef   :  { %v1559_v1 = vmul.f32 %v2428_v49, %v1542_v18 }
 0x6f0   :  { %v2430_v47 = vpop.eup %2429 }
 0x6f1   :  { %v1560_v6 = vadd.f32 %v1559_v1, %v3947_v29  ;;  %v1562_v19 = vsub.f32 1.0, %v2430_v47  ;;  %v1564_v27 = vmul.f32 %v2430_v47, %v3716_v43 }
 0x6f3   :  { %2431 = vtanh.f32 %v1560_v6 }
 0x700   :  { %v2432_v25 = vpop.eup %2431 }
 0x701   :  { %v1563_v26 = vmul.f32 %v2432_v25, %v1562_v19 }
 0x703   :  { %v1565_v28 = vadd.f32 %v1564_v27, %v1563_v26 }
 0x705   :  { %1636 = vmatmul.mubr.f32.vlgmr.msra.gmra.mxu0 %v1565_v28  ;;  %2357 = vmatmul.mubr.f32.vlgmr.msra.gmra.mxu1 %v1565_v28  ;;  %v1757_v32 = vmul.f32 %v2491_v31, %v1565_v28 }
 0x707   :  { %1771 = vadd.xlane.f32.xlu0 %v1757_v32 }
 0x71d   :  { %1782 = vperm.xlu0 %2362, %v1913_v33  }
 0x790   :  { %v1772_v20 = vpop.xlane.xlu0 %1771 }
 0x798   :  { %v1783_v52 = vpop.permute.xlu0 %1782 }
 0x799   :  { %v1786_v7 = vadd.f32 %v1783_v52, %v1762_v3  ;;  %v1789_v17 = vadd.f32 %v1783_v52, %v1768_v46  ;;  %v1791_v27 = vadd.f32 %v1783_v52, %v1772_v20 }
 0x79b   :  { %v1802_v63 = vmul.f32 0.2, %v1786_v7  ;;  %vm1794_vm3 = vcmp.gt.f32.partialorder %v1786_v7, 0.0  ;;  %v1805_v19 = vmul.f32 0.2, %v1789_v17  ;;  %vm1797_vm8 = vcmp.gt.f32.partialorder %v1789_v17, 0.0 }
 0x79c   :  { %vm1799_vm12 = vcmp.gt.f32.partialorder %v1791_v27, 0.0 }
 0x79d   :  { %v1810_v30 = vsel %vm1794_vm3, %v1786_v7, %v1802_v63  ;;  %v1813_v32 = vsel %vm1797_vm8, %v1789_v17, %v1805_v19 }
 0x79e   :  { %v1834_v49 = vrot.slane %v1810_v30, %v1829_v35 }
 0x7c5   :  { %v1637_v34 = vpop.f32.mrf.mxu0  ;;  %v1708_v36 = vpop.f32.mrf.mxu1 }
 0x7c6   :  { %v1638_v37 = vadd.f32 %v1637_v34, %v3944_v53  ;;  %v1709_v59 = vadd.f32 %v1708_v36, %v3068_v24  ;;  %v1785_v24 = vadd.f32 %v1783_v52, %v1760_v40  ;;  %v1764_v53 = vpop.xlane.xlu1 %1763  ;;  %v1807_v34 = vmul.f32 0.2, %v1791_v27 }
 0x7c7   :  { %v1639_v38 = vpop.f32.mrf.mxu0  ;;  %v2358_v54 = vpop.f32.mrf.mxu1  ;;  %v1787_v14 = vadd.f32 %v1783_v52, %v1764_v53 }
 0x7c8   :  { %v1712_v9 = vadd.f32 %v1638_v37, %v3948_v21  ;;  %v1640_v10 = vadd.f32 %v1639_v38, %v3053_v50  ;;  %v1801_v15 = vmul.f32 0.2, %v1785_v24  ;;  %vm1793_vm2 = vcmp.gt.f32.partialorder %v1785_v24, 0.0 }
 0x7c9   :  { %v1803_v8 = vmul.f32 0.2, %v1787_v14  ;;  %vm1795_vm4 = vcmp.gt.f32.partialorder %v1787_v14, 0.0  ;;  %v1846_v38 = vrot.slane %v1813_v32, %v1829_v35 }
 0x7ca   :  { %v1910_v42 = vmul.f32 -1.442695, %v1712_v9  ;;  %v1719_v55 = vadd.f32 %v1640_v10, %v3949_v56  ;;  %v1766_v23 = vpop.xlane.xlu1 %1765  ;;  %v1809_v48 = vsel %vm1793_vm2, %v1785_v24, %v1801_v15 }
 0x7cb   :  { %v1788_v12 = vadd.f32 %v1783_v52, %v1766_v23  ;;  %v1811_v16 = vsel %vm1795_vm4, %v1787_v14, %v1803_v8  ;;  %v1830_v18 = vrot.slane %v1809_v48, %v1829_v35 }
 0x7cc   :  { %2433 = vpow2.f32 %v1910_v42  ;;  %v1911_v22 = vmul.f32 -1.442695, %v1719_v55  ;;  %v1838_v47 = vrot.slane %v1811_v16, %v1829_v35  ;;  %v1815_v42 = vsel %vm1799_vm12, %v1791_v27, %v1807_v34 }
 0x7cd   :  { %v1804_v1 = vmul.f32 0.2, %v1788_v12  ;;  %vm1796_vm6 = vcmp.gt.f32.partialorder %v1788_v12, 0.0  ;;  %v1860_v25 = vsel %vm1859_vm5, %v1834_v49, %v1830_v18 }
 0x7ce   :  { %2435 = vpow2.f32 %v1911_v22  ;;  %v1770_v29 = vpop.xlane.xlu1 %1769  ;;  %v1854_v22 = vrot.slane %v1815_v42, %v1829_v35 }
 0x7cf   :  { %v1790_v6 = vadd.f32 %v1783_v52, %v1770_v29  ;;  %v1812_v26 = vsel %vm1796_vm6, %v1788_v12, %v1804_v1 }
 0x7d0   :  { %v1842_v33 = vrot.slane %v1812_v26, %v1829_v35 }
 0x7d1   :  { %vm1798_vm10 = vcmp.gt.f32.partialorder %v1790_v6, 0.0 }
 0x7d9   :  { %v2434_v57 = vpop.eup %2433 }
 0x7da   :  { %v1716_v51 = vadd.f32 1.0, %v2434_v57 }
 0x7db   :  { %v2436_v61 = vpop.eup %2435 }
 0x7dc   :  { %2437 = vrcp.f32 %v1716_v51  ;;  %v1723_v60 = vadd.f32 1.0, %v2436_v61 }
 0x7de   :  { %2439 = vrcp.f32 %v1723_v60 }
 0x7e9   :  { %v2438_v58 = vpop.eup %2437 }
 0x7ea   :  { %v1726_v62 = vmul.f32 %v2438_v58, %v1709_v59 }
 0x7eb   :  { %v2440_v43 = vpop.eup %2439 }
 0x7ec   :  { %v1727_v44 = vadd.f32 %v1726_v62, %v3950_v41  ;;  %v1729_v50 = vsub.f32 1.0, %v2440_v43  ;;  %v1731_v2 = vmul.f32 %v2440_v43, %v1565_v28  ;;  %v1806_v28 = vmul.f32 0.2, %v1790_v6 }
 0x7ee   :  { %2441 = vtanh.f32 %v1727_v44  ;;  %v1814_v37 = vsel %vm1798_vm10, %v1790_v6, %v1806_v28 }
 0x7ef   :  { %v1850_v10 = vrot.slane %v1814_v37, %v1829_v35 }
 0x7fb   :  { %v2442_v39 = vpop.eup %2441 }
 0x7fc   :  { %v1730_v0 = vmul.f32 %v2442_v39, %v1729_v50 }
 0x7fe   :  { %v1732_v4 = vadd.f32 %v1731_v2, %v1730_v0 }
 0x800   :  { %v1758_v5 = vmul.f32 %v2491_v31, %v1732_v4  ;;  %v1862_v31 = vsel %vm1861_vm7, %v1838_v47, %v1860_v25 }
 0x801   :  { %v1864_v36 = vsel %vm1863_vm9, %v1842_v33, %v1862_v31 }
 0x802   :  { %1773 = vadd.xlane.f32.xlu1 %v1758_v5  ;;  %v1866_v21 = vsel %vm1865_vm11, %v1846_v38, %v1864_v36 }
 0x803   :  { %v1868_v55 = vsel %vm1867_vm13, %v1850_v10, %v1866_v21 }
 0x804   :  { %v1870_v61 = vsel %vm1869_vm15, %v1854_v22, %v1868_v55 }
 0x88b   :  { %v1774_v54 = vpop.xlane.xlu1 %1773 }
 0x88c   :  { %v1792_v9 = vadd.f32 %v1783_v52, %v1774_v54 }
 0x88e   :  { %vm1800_vm14 = vcmp.gt.f32.partialorder %v1792_v9, 0.0  ;;  %v1808_v56 = vmul.f32 0.2, %v1792_v9 }
 0x890   :  { %v1816_v57 = vsel %vm1800_vm14, %v1792_v9, %v1808_v56 }
 0x891   :  { %v1858_v51 = vrot.slane %v1816_v57, %v1829_v35 }
 0x893   :  { %v1872_v60 = vsel %vm1871_vm0, %v1858_v51, %v1870_v61 }
 0x894   :  { %1875 = vst.msk [vmem:[%s3818_s7] sm:$0xff] %vm1874_vm1, %v1872_v60 }

</bundles_post_ra>
